<compile_context>
chip_gen: v6e
topology: v6e:2x2x1
jax: 0.10.0
libtpu: 0.0.40
codegen_flags: <defaults>
</compile_context>

<pallas_src>
import jax
import jax.numpy as jnp
from jax import lax
from jax.experimental import pallas as pl
from jax.experimental.pallas import tpu as pltpu


def _make_kernel(M, F, K, Kp, MF, B_TILE, aggregation):
    def kernel(p_ref, wc_ref, wf_ref, bf_ref, out_ref, conv_ref):
        # ---- Stage 1: conv for every image in the tile (all M*F filters per
        # matmul, bias folded via the ones-row), stacked into VMEM scratch ----
        wc = wc_ref[...]                                           # (MF, Cp) bf16
        for b in range(B_TILE):
            c = jnp.dot(wc, p_ref[b],
                        preferred_element_type=jnp.float32)       # (MF, Sp) f32
            conv_ref[b * MF:(b + 1) * MF, :] = (
                jnp.maximum(c, 0.0).astype(jnp.bfloat16))          # ReLU -> bf16

        # ---- Stage 2: ONE FC matmul for the whole batch tile ----------------
        # big[b*MF + r, r*Kp + k] = sum_s conv[b, r, s] * W[r, s, k]
        big = jnp.dot(conv_ref[...], wf_ref[...],
                      preferred_element_type=jnp.float32)          # (B_TILE*MF, MF*Kp)

        bias = bf_ref[...]                                         # (1 or M, Kp) f32
        if aggregation == 'softmax_mean':
            # Hoisted out of the loops: JAX does not CSE broadcast_in_dim.
            lane_valid = lax.broadcasted_iota(jnp.int32, (1, Kp), 1) < K

        rows = []
        for b in range(B_TILE):
            if aggregation == 'mean':
                # wfbig and bias were pre-scaled by 1/M (bias pre-summed over
                # models) host-side: one pass over the MF diagonal tiles.
                acc = bias                                         # (1, Kp)
                for r in range(MF):
                    rr = b * MF + r
                    acc = acc + big[rr:rr + 1, r * Kp:(r + 1) * Kp]
                rows.append(acc)
            else:  # 'softmax_mean'
                acc = jnp.zeros((1, Kp), jnp.float32)
                for m in range(M):
                    lm = bias[m:m + 1, :]
                    for f in range(F):
                        r = m * F + f
                        rr = b * MF + r
                        lm = lm + big[rr:rr + 1, r * Kp:(r + 1) * Kp]
                    lm = jnp.where(lane_valid, lm, -1e30)          # mask pad lanes
                    acc = acc + jax.nn.softmax(lm, axis=-1)
                rows.append(acc * (1.0 / M))
        out_ref[...] = jnp.concatenate(rows, axis=0)               # (B_TILE, Kp)

    return kernel


def prepare_ensemble_elm_params(wconv, bconv, wfc, bfc, H, W, aggregation='mean'):
    """Re-layout the fixed ELM parameters once (weights never change).

    wconv: (M, F, C, 3, 3), bconv: (M, F)   -- per-model conv params (PyTorch layout)
    wfc:   (M, K, F*H*W),   bfc: (M, K)     -- per-model fc params (PyTorch layout)
    """
    if aggregation == 'vote':
        # TODO(synk): 'vote' aggregation (torch.mode over per-model argmax) has
        # no clean Pallas equivalent (integer mode over models); not implemented.
        raise NotImplementedError("'vote' aggregation is not implemented")

    M, F, C, KH, KW = wconv.shape
    K = bfc.shape[1]
    S = H * W
    MF = M * F
    Cp0 = C * KH * KW + 1                      # +1 ones-row folds the conv bias
    Cp = ((Cp0 + 15) // 16) * 16               # 16-multiple keeps bf16 packing dense
    Kp = ((K + 127) // 128) * 128              # lane-pad the class dim
    Sp = ((S + 127) // 128) * 128              # lane-pad the spatial dim

    wc = wconv.reshape(M, F, C * KH * KW)
    wc = jnp.concatenate([wc, bconv[:, :, None]], axis=2).reshape(MF, Cp0)
    wc = jnp.pad(wc, ((0, 0), (0, Cp - Cp0))).astype(jnp.bfloat16)     # (MF, Cp)

    # Block-expanded FC weight: wfbig[s, r*Kp + k] = wfc[m, k, f*S + s], r = m*F + f
    w4 = wfc.reshape(M, K, F, S).transpose(0, 2, 3, 1).reshape(MF, S, K)
    w4 = jnp.pad(w4, ((0, 0), (0, Sp - S), (0, Kp - K)))               # (MF, Sp, Kp)
    wfbig = w4.transpose(1, 0, 2).reshape(Sp, MF * Kp)

    bf = jnp.pad(bfc, ((0, 0), (0, Kp - K))).astype(jnp.float32)       # (M, Kp)
    if aggregation == 'mean':
        # Fold the ensemble average host-side.
        wfbig = wfbig * (1.0 / M)
        bf = jnp.sum(bf, axis=0, keepdims=True) * (1.0 / M)            # (1, Kp)
    wfbig = wfbig.astype(jnp.bfloat16)                                  # (Sp, MF*Kp)

    return dict(wc=wc, wfbig=wfbig, bf=bf, aggregation=aggregation,
                dims=(M, F, K, S, MF, Cp0, Cp, Kp, Sp))


def ensemble_elm_forward(x, params):
    """x: (B, C, H, W) NCHW float32.  Returns aggregated (B, K) float32."""
    aggregation = params['aggregation']
    M, F, K, S, MF, Cp0, Cp, Kp, Sp = params['dims']
    B, C, H, W = x.shape
    KH = KW = 3

    # ---------------- glue (plain JAX): im2col + ones-row + padding -----------
    # TODO(synk): for large H*W / batch (esp. v5e), stream the raw padded image
    # block and build the 9 shifted views in-kernel instead of materializing
    # the ~5x-expanded patches array in HBM.
    xp = jnp.pad(x, ((0, 0), (0, 0), (1, 1), (1, 1)))                  # padding=1
    cols = [xp[:, :, di:di + H, dj:dj + W]
            for di in range(KH) for dj in range(KW)]                   # (B, C, H, W) each
    patches = jnp.stack(cols, axis=2).reshape(B, C * KH * KW, S)       # (B, C*9, S)
    patches = jnp.concatenate(
        [patches, jnp.ones((B, 1, S), x.dtype)], axis=1)               # (B, C*9+1, S)
    patches = jnp.pad(patches, ((0, 0), (0, Cp - Cp0), (0, Sp - S)))   # (B, Cp, Sp)

    # Batch tiling: stack B_TILE images so the FC matmul lhs has ~MXU-height
    # rows (8*MF = 192 at MF=24).  B_TILE=8 keeps the output block
    # sublane-aligned for any batch; small batches use the whole batch at once.
    B_TILE = B if B <= 8 else 8
    Bp = ((B + B_TILE - 1) // B_TILE) * B_TILE
    if Bp != B:
        patches = jnp.pad(patches, ((0, Bp - B), (0, 0), (0, 0)))
    patches = patches.astype(jnp.bfloat16)

    n_bias_rows = params['bf'].shape[0]
    kernel = _make_kernel(M, F, K, Kp, MF, B_TILE, aggregation)
    grid_spec = pltpu.PrefetchScalarGridSpec(
        num_scalar_prefetch=0,
        grid=(Bp // B_TILE,),
        in_specs=[
            pl.BlockSpec((B_TILE, Cp, Sp), lambda t: (t, 0, 0)),       # patches tile
            # Grid-invariant weights (constant index maps -> fetched once).
            pl.BlockSpec((MF, Cp), lambda t: (0, 0)),                  # conv W (+bias col)
            pl.BlockSpec((Sp, MF * Kp), lambda t: (0, 0)),             # block-expanded fc W
            pl.BlockSpec((n_bias_rows, Kp), lambda t: (0, 0)),         # fc bias
        ],
        out_specs=pl.BlockSpec((B_TILE, Kp), lambda t: (t, 0)),        # 2-D lane-dense
        scratch_shapes=[pltpu.VMEM((B_TILE * MF, Sp), jnp.bfloat16)],  # stacked conv out
    )
    out = pl.pallas_call(
        kernel,
        out_shape=jax.ShapeDtypeStruct((Bp, Kp), jnp.float32),
        grid_spec=grid_spec,
        compiler_params=pltpu.CompilerParams(
            dimension_semantics=("parallel",)),                        # batch-tile axis
    )(patches, params['wc'], params['wfbig'], params['bf'])
    return out[:B, :K]


if __name__ == "__main__":
    # Small shapes consistent with the module's forward.
    n_models, C, F, K = 3, 4, 8, 10
    B, H, W = 2, 16, 16

    key = jax.random.PRNGKey(0)
    kx, kw1, kb1, kw2, kb2 = jax.random.split(key, 5)
    x = jax.random.normal(kx, (B, C, H, W), jnp.float32)
    # Deterministic synthetic ELM parameters (fixed random weights, not trained).
    wconv = 0.1 * jax.random.normal(kw1, (n_models, F, C, 3, 3), jnp.float32)
    bconv = 0.1 * jax.random.normal(kb1, (n_models, F), jnp.float32)
    wfc = 0.02 * jax.random.normal(kw2, (n_models, K, F * H * W), jnp.float32)
    bfc = 0.02 * jax.random.normal(kb2, (n_models, K), jnp.float32)

    # Pure-JAX reference of the PyTorch forward.
    def per_model_logits(x, wconv, bconv, wfc, bfc):
        outs = []
        for m in range(n_models):
            y = jax.lax.conv_general_dilated(
                x, wconv[m], (1, 1), 'SAME',
                dimension_numbers=('NCHW', 'OIHW', 'NCHW'),
                precision=jax.lax.Precision.HIGHEST)
            y = jnp.maximum(y + bconv[m][None, :, None, None], 0.0)
            flat = y.reshape(x.shape[0], -1)                           # (B, F*H*W)
            outs.append(jnp.matmul(flat, wfc[m].T,
                                   precision=jax.lax.Precision.HIGHEST) + bfc[m])
        return jnp.stack(outs, axis=0)                                 # (M, B, K)

    logits = per_model_logits(x, wconv, bconv, wfc, bfc)
    ref_mean = jnp.mean(logits, axis=0)
    ref_softmax_mean = jnp.mean(jax.nn.softmax(logits, axis=-1), axis=0)

    # 'mean' aggregation
    params_mean = prepare_ensemble_elm_params(wconv, bconv, wfc, bfc, H, W,
                                              aggregation='mean')
    out_mean = jax.block_until_ready(ensemble_elm_forward(x, params_mean))
    assert out_mean.shape == (B, K)
    assert jnp.allclose(out_mean, ref_mean, rtol=2e-2, atol=2e-2)

    # 'softmax_mean' aggregation
    params_sm = prepare_ensemble_elm_params(wconv, bconv, wfc, bfc, H, W,
                                            aggregation='softmax_mean')
    out_sm = jax.block_until_ready(ensemble_elm_forward(x, params_sm))
    assert out_sm.shape == (B, K)
    assert jnp.allclose(out_sm, ref_softmax_mean, rtol=2e-2, atol=2e-2)

    print("KERNEL_OK")
</pallas_src>

<mosaic_0001>
module attributes {stable_mosaic.version = 11 : i64} {
  func.func @kernel(%arg0: i32, %arg1: memref<2x48x256xbf16, #tpu.memory_space<vmem>>, %arg2: memref<24x48xbf16, #tpu.memory_space<vmem>>, %arg3: memref<256x3072xbf16, #tpu.memory_space<vmem>>, %arg4: memref<1x128xf32, #tpu.memory_space<vmem>>, %arg5: memref<2x128xf32, #tpu.memory_space<vmem>>, %arg6: memref<48x256xbf16, #tpu.memory_space<vmem>>) attributes {dimension_semantics = [#tpu.dimension_semantics<parallel>], iteration_bounds = array<i64: 1>, scalar_prefetch = 0 : i64, scratch_operands = 1 : i64, tpu.core_type = #tpu.core_type<tc>, window_params = [{transform_indices = @transform_0, window_bounds = array<i64: 2, 48, 256>}, {pipeline_mode = #tpu.pipeline_mode<synchronous>, transform_indices = @transform_1, window_bounds = array<i64: 24, 48>}, {pipeline_mode = #tpu.pipeline_mode<synchronous>, transform_indices = @transform_2, window_bounds = array<i64: 256, 3072>}, {pipeline_mode = #tpu.pipeline_mode<synchronous>, transform_indices = @transform_3, window_bounds = array<i64: 1, 128>}, {transform_indices = @transform_4, window_bounds = array<i64: 2, 128>}]} {
    %c0 = arith.constant 0 : index
    %c0_0 = arith.constant 0 : index
    %0 = vector.load %arg2[%c0, %c0_0] : memref<24x48xbf16, #tpu.memory_space<vmem>>, vector<24x48xbf16>
    %c0_1 = arith.constant 0 : index
    %c0_2 = arith.constant 0 : index
    %c0_3 = arith.constant 0 : index
    %1 = vector.load %arg1[%c0_1, %c0_2, %c0_3] : memref<2x48x256xbf16, #tpu.memory_space<vmem>>, vector<1x48x256xbf16>
    %2 = vector.shape_cast %1 : vector<1x48x256xbf16> to vector<48x256xbf16>
    %cst = arith.constant dense<0.000000e+00> : vector<24x256xf32>
    %3 = tpu.matmul %0, %2, %cst {dimension_numbers = #tpu.dot_dimension_numbers<[1], [0], [0], [1], [0, 0, 1, 1], [], []>} : vector<24x48xbf16>, vector<48x256xbf16>, vector<24x256xf32> -> vector<24x256xf32>
    %cst_4 = arith.constant 0.000000e+00 : f32
    %4 = vector.broadcast %cst_4 : f32 to vector<24x256xf32>
    %5 = arith.maximumf %3, %4 : vector<24x256xf32>
    %6 = arith.truncf %5 : vector<24x256xf32> to vector<24x256xbf16>
    %c0_5 = arith.constant 0 : index
    %c0_6 = arith.constant 0 : index
    %7 = vector.load %arg6[%c0_5, %c0_6] : memref<48x256xbf16, #tpu.memory_space<vmem>>, vector<24x256xbf16>
    tpu.vector_store %arg6[%c0_5, %c0_6], %6 {strides = array<i32>} : memref<48x256xbf16, #tpu.memory_space<vmem>>, vector<24x256xbf16>,
    %c1 = arith.constant 1 : index
    %c0_7 = arith.constant 0 : index
    %c0_8 = arith.constant 0 : index
    %8 = vector.load %arg1[%c1, %c0_7, %c0_8] : memref<2x48x256xbf16, #tpu.memory_space<vmem>>, vector<1x48x256xbf16>
    %9 = vector.shape_cast %8 : vector<1x48x256xbf16> to vector<48x256xbf16>
    %cst_9 = arith.constant dense<0.000000e+00> : vector<24x256xf32>
    %10 = tpu.matmul %0, %9, %cst_9 {dimension_numbers = #tpu.dot_dimension_numbers<[1], [0], [0], [1], [0, 0, 1, 1], [], []>} : vector<24x48xbf16>, vector<48x256xbf16>, vector<24x256xf32> -> vector<24x256xf32>
    %cst_10 = arith.constant 0.000000e+00 : f32
    %11 = vector.broadcast %cst_10 : f32 to vector<24x256xf32>
    %12 = arith.maximumf %10, %11 : vector<24x256xf32>
    %13 = arith.truncf %12 : vector<24x256xf32> to vector<24x256xbf16>
    %c24 = arith.constant 24 : index
    %c0_11 = arith.constant 0 : index
    %14 = vector.load %arg6[%c24, %c0_11] : memref<48x256xbf16, #tpu.memory_space<vmem>>, vector<24x256xbf16>
    tpu.vector_store %arg6[%c24, %c0_11], %13 {strides = array<i32>} : memref<48x256xbf16, #tpu.memory_space<vmem>>, vector<24x256xbf16>,
    %c0_12 = arith.constant 0 : index
    %c0_13 = arith.constant 0 : index
    %15 = vector.load %arg6[%c0_12, %c0_13] : memref<48x256xbf16, #tpu.memory_space<vmem>>, vector<48x256xbf16>
    %c0_14 = arith.constant 0 : index
    %c0_15 = arith.constant 0 : index
    %16 = vector.load %arg3[%c0_14, %c0_15] : memref<256x3072xbf16, #tpu.memory_space<vmem>>, vector<256x3072xbf16>
    %cst_16 = arith.constant dense<0.000000e+00> : vector<48x3072xf32>
    %17 = tpu.matmul %15, %16, %cst_16 {dimension_numbers = #tpu.dot_dimension_numbers<[1], [0], [0], [1], [0, 0, 1, 1], [], []>} : vector<48x256xbf16>, vector<256x3072xbf16>, vector<48x3072xf32> -> vector<48x3072xf32>
    %c0_17 = arith.constant 0 : index
    %c0_18 = arith.constant 0 : index
    %18 = vector.load %arg4[%c0_17, %c0_18] : memref<1x128xf32, #tpu.memory_space<vmem>>, vector<1x128xf32>
    %19 = vector.extract_strided_slice %17 {offsets = [0, 0], sizes = [1, 128], strides = [1, 1]} : vector<48x3072xf32> to vector<1x128xf32>
    %20 = arith.addf %18, %19 : vector<1x128xf32>
    %21 = vector.extract_strided_slice %17 {offsets = [1, 128], sizes = [1, 128], strides = [1, 1]} : vector<48x3072xf32> to vector<1x128xf32>
    %22 = arith.addf %20, %21 : vector<1x128xf32>
    %23 = vector.extract_strided_slice %17 {offsets = [2, 256], sizes = [1, 128], strides = [1, 1]} : vector<48x3072xf32> to vector<1x128xf32>
    %24 = arith.addf %22, %23 : vector<1x128xf32>
    %25 = vector.extract_strided_slice %17 {offsets = [3, 384], sizes = [1, 128], strides = [1, 1]} : vector<48x3072xf32> to vector<1x128xf32>
    %26 = arith.addf %24, %25 : vector<1x128xf32>
    %27 = vector.extract_strided_slice %17 {offsets = [4, 512], sizes = [1, 128], strides = [1, 1]} : vector<48x3072xf32> to vector<1x128xf32>
    %28 = arith.addf %26, %27 : vector<1x128xf32>
    %29 = vector.extract_strided_slice %17 {offsets = [5, 640], sizes = [1, 128], strides = [1, 1]} : vector<48x3072xf32> to vector<1x128xf32>
    %30 = arith.addf %28, %29 : vector<1x128xf32>
    %31 = vector.extract_strided_slice %17 {offsets = [6, 768], sizes = [1, 128], strides = [1, 1]} : vector<48x3072xf32> to vector<1x128xf32>
    %32 = arith.addf %30, %31 : vector<1x128xf32>
    %33 = vector.extract_strided_slice %17 {offsets = [7, 896], sizes = [1, 128], strides = [1, 1]} : vector<48x3072xf32> to vector<1x128xf32>
    %34 = arith.addf %32, %33 : vector<1x128xf32>
    %35 = vector.extract_strided_slice %17 {offsets = [8, 1024], sizes = [1, 128], strides = [1, 1]} : vector<48x3072xf32> to vector<1x128xf32>
    %36 = arith.addf %34, %35 : vector<1x128xf32>
    %37 = vector.extract_strided_slice %17 {offsets = [9, 1152], sizes = [1, 128], strides = [1, 1]} : vector<48x3072xf32> to vector<1x128xf32>
    %38 = arith.addf %36, %37 : vector<1x128xf32>
    %39 = vector.extract_strided_slice %17 {offsets = [10, 1280], sizes = [1, 128], strides = [1, 1]} : vector<48x3072xf32> to vector<1x128xf32>
    %40 = arith.addf %38, %39 : vector<1x128xf32>
    %41 = vector.extract_strided_slice %17 {offsets = [11, 1408], sizes = [1, 128], strides = [1, 1]} : vector<48x3072xf32> to vector<1x128xf32>
    %42 = arith.addf %40, %41 : vector<1x128xf32>
    %43 = vector.extract_strided_slice %17 {offsets = [12, 1536], sizes = [1, 128], strides = [1, 1]} : vector<48x3072xf32> to vector<1x128xf32>
    %44 = arith.addf %42, %43 : vector<1x128xf32>
    %45 = vector.extract_strided_slice %17 {offsets = [13, 1664], sizes = [1, 128], strides = [1, 1]} : vector<48x3072xf32> to vector<1x128xf32>
    %46 = arith.addf %44, %45 : vector<1x128xf32>
    %47 = vector.extract_strided_slice %17 {offsets = [14, 1792], sizes = [1, 128], strides = [1, 1]} : vector<48x3072xf32> to vector<1x128xf32>
    %48 = arith.addf %46, %47 : vector<1x128xf32>
    %49 = vector.extract_strided_slice %17 {offsets = [15, 1920], sizes = [1, 128], strides = [1, 1]} : vector<48x3072xf32> to vector<1x128xf32>
    %50 = arith.addf %48, %49 : vector<1x128xf32>
    %51 = vector.extract_strided_slice %17 {offsets = [16, 2048], sizes = [1, 128], strides = [1, 1]} : vector<48x3072xf32> to vector<1x128xf32>
    %52 = arith.addf %50, %51 : vector<1x128xf32>
    %53 = vector.extract_strided_slice %17 {offsets = [17, 2176], sizes = [1, 128], strides = [1, 1]} : vector<48x3072xf32> to vector<1x128xf32>
    %54 = arith.addf %52, %53 : vector<1x128xf32>
    %55 = vector.extract_strided_slice %17 {offsets = [18, 2304], sizes = [1, 128], strides = [1, 1]} : vector<48x3072xf32> to vector<1x128xf32>
    %56 = arith.addf %54, %55 : vector<1x128xf32>
    %57 = vector.extract_strided_slice %17 {offsets = [19, 2432], sizes = [1, 128], strides = [1, 1]} : vector<48x3072xf32> to vector<1x128xf32>
    %58 = arith.addf %56, %57 : vector<1x128xf32>
    %59 = vector.extract_strided_slice %17 {offsets = [20, 2560], sizes = [1, 128], strides = [1, 1]} : vector<48x3072xf32> to vector<1x128xf32>
    %60 = arith.addf %58, %59 : vector<1x128xf32>
    %61 = vector.extract_strided_slice %17 {offsets = [21, 2688], sizes = [1, 128], strides = [1, 1]} : vector<48x3072xf32> to vector<1x128xf32>
    %62 = arith.addf %60, %61 : vector<1x128xf32>
    %63 = vector.extract_strided_slice %17 {offsets = [22, 2816], sizes = [1, 128], strides = [1, 1]} : vector<48x3072xf32> to vector<1x128xf32>
    %64 = arith.addf %62, %63 : vector<1x128xf32>
    %65 = vector.extract_strided_slice %17 {offsets = [23, 2944], sizes = [1, 128], strides = [1, 1]} : vector<48x3072xf32> to vector<1x128xf32>
    %66 = arith.addf %64, %65 : vector<1x128xf32>
    %67 = vector.extract_strided_slice %17 {offsets = [24, 0], sizes = [1, 128], strides = [1, 1]} : vector<48x3072xf32> to vector<1x128xf32>
    %68 = arith.addf %18, %67 : vector<1x128xf32>
    %69 = vector.extract_strided_slice %17 {offsets = [25, 128], sizes = [1, 128], strides = [1, 1]} : vector<48x3072xf32> to vector<1x128xf32>
    %70 = arith.addf %68, %69 : vector<1x128xf32>
    %71 = vector.extract_strided_slice %17 {offsets = [26, 256], sizes = [1, 128], strides = [1, 1]} : vector<48x3072xf32> to vector<1x128xf32>
    %72 = arith.addf %70, %71 : vector<1x128xf32>
    %73 = vector.extract_strided_slice %17 {offsets = [27, 384], sizes = [1, 128], strides = [1, 1]} : vector<48x3072xf32> to vector<1x128xf32>
    %74 = arith.addf %72, %73 : vector<1x128xf32>
    %75 = vector.extract_strided_slice %17 {offsets = [28, 512], sizes = [1, 128], strides = [1, 1]} : vector<48x3072xf32> to vector<1x128xf32>
    %76 = arith.addf %74, %75 : vector<1x128xf32>
    %77 = vector.extract_strided_slice %17 {offsets = [29, 640], sizes = [1, 128], strides = [1, 1]} : vector<48x3072xf32> to vector<1x128xf32>
    %78 = arith.addf %76, %77 : vector<1x128xf32>
    %79 = vector.extract_strided_slice %17 {offsets = [30, 768], sizes = [1, 128], strides = [1, 1]} : vector<48x3072xf32> to vector<1x128xf32>
    %80 = arith.addf %78, %79 : vector<1x128xf32>
    %81 = vector.extract_strided_slice %17 {offsets = [31, 896], sizes = [1, 128], strides = [1, 1]} : vector<48x3072xf32> to vector<1x128xf32>
    %82 = arith.addf %80, %81 : vector<1x128xf32>
    %83 = vector.extract_strided_slice %17 {offsets = [32, 1024], sizes = [1, 128], strides = [1, 1]} : vector<48x3072xf32> to vector<1x128xf32>
    %84 = arith.addf %82, %83 : vector<1x128xf32>
    %85 = vector.extract_strided_slice %17 {offsets = [33, 1152], sizes = [1, 128], strides = [1, 1]} : vector<48x3072xf32> to vector<1x128xf32>
    %86 = arith.addf %84, %85 : vector<1x128xf32>
    %87 = vector.extract_strided_slice %17 {offsets = [34, 1280], sizes = [1, 128], strides = [1, 1]} : vector<48x3072xf32> to vector<1x128xf32>
    %88 = arith.addf %86, %87 : vector<1x128xf32>
    %89 = vector.extract_strided_slice %17 {offsets = [35, 1408], sizes = [1, 128], strides = [1, 1]} : vector<48x3072xf32> to vector<1x128xf32>
    %90 = arith.addf %88, %89 : vector<1x128xf32>
    %91 = vector.extract_strided_slice %17 {offsets = [36, 1536], sizes = [1, 128], strides = [1, 1]} : vector<48x3072xf32> to vector<1x128xf32>
    %92 = arith.addf %90, %91 : vector<1x128xf32>
    %93 = vector.extract_strided_slice %17 {offsets = [37, 1664], sizes = [1, 128], strides = [1, 1]} : vector<48x3072xf32> to vector<1x128xf32>
    %94 = arith.addf %92, %93 : vector<1x128xf32>
    %95 = vector.extract_strided_slice %17 {offsets = [38, 1792], sizes = [1, 128], strides = [1, 1]} : vector<48x3072xf32> to vector<1x128xf32>
    %96 = arith.addf %94, %95 : vector<1x128xf32>
    %97 = vector.extract_strided_slice %17 {offsets = [39, 1920], sizes = [1, 128], strides = [1, 1]} : vector<48x3072xf32> to vector<1x128xf32>
    %98 = arith.addf %96, %97 : vector<1x128xf32>
    %99 = vector.extract_strided_slice %17 {offsets = [40, 2048], sizes = [1, 128], strides = [1, 1]} : vector<48x3072xf32> to vector<1x128xf32>
    %100 = arith.addf %98, %99 : vector<1x128xf32>
    %101 = vector.extract_strided_slice %17 {offsets = [41, 2176], sizes = [1, 128], strides = [1, 1]} : vector<48x3072xf32> to vector<1x128xf32>
    %102 = arith.addf %100, %101 : vector<1x128xf32>
    %103 = vector.extract_strided_slice %17 {offsets = [42, 2304], sizes = [1, 128], strides = [1, 1]} : vector<48x3072xf32> to vector<1x128xf32>
    %104 = arith.addf %102, %103 : vector<1x128xf32>
    %105 = vector.extract_strided_slice %17 {offsets = [43, 2432], sizes = [1, 128], strides = [1, 1]} : vector<48x3072xf32> to vector<1x128xf32>
    %106 = arith.addf %104, %105 : vector<1x128xf32>
    %107 = vector.extract_strided_slice %17 {offsets = [44, 2560], sizes = [1, 128], strides = [1, 1]} : vector<48x3072xf32> to vector<1x128xf32>
    %108 = arith.addf %106, %107 : vector<1x128xf32>
    %109 = vector.extract_strided_slice %17 {offsets = [45, 2688], sizes = [1, 128], strides = [1, 1]} : vector<48x3072xf32> to vector<1x128xf32>
    %110 = arith.addf %108, %109 : vector<1x128xf32>
    %111 = vector.extract_strided_slice %17 {offsets = [46, 2816], sizes = [1, 128], strides = [1, 1]} : vector<48x3072xf32> to vector<1x128xf32>
    %112 = arith.addf %110, %111 : vector<1x128xf32>
    %113 = vector.extract_strided_slice %17 {offsets = [47, 2944], sizes = [1, 128], strides = [1, 1]} : vector<48x3072xf32> to vector<1x128xf32>
    %114 = arith.addf %112, %113 : vector<1x128xf32>
    %115 = tpu.concatenate %66, %114 in 0 : vector<1x128xf32>, vector<1x128xf32> -> vector<2x128xf32>
    %c0_19 = arith.constant 0 : index
    %c0_20 = arith.constant 0 : index
    %116 = vector.load %arg5[%c0_19, %c0_20] : memref<2x128xf32, #tpu.memory_space<vmem>>, vector<2x128xf32>
    tpu.vector_store %arg5[%c0_19, %c0_20], %115 {strides = array<i32>} : memref<2x128xf32, #tpu.memory_space<vmem>>, vector<2x128xf32>,
    return
  }
  func.func @transform_0(%arg0: i32) -> (i32, i32, i32) {
    %c0_i32 = arith.constant 0 : i32
    %c0_i32_0 = arith.constant 0 : i32
    %c0_i32_1 = arith.constant 0 : i32
    return %arg0, %c0_i32, %c0_i32_0 : i32, i32, i32
  }
  func.func @transform_1(%arg0: i32) -> (i32, i32) {
    %c0_i32 = arith.constant 0 : i32
    %c0_i32_0 = arith.constant 0 : i32
    %c0_i32_1 = arith.constant 0 : i32
    return %c0_i32, %c0_i32_0 : i32, i32
  }
  func.func @transform_2(%arg0: i32) -> (i32, i32) {
    %c0_i32 = arith.constant 0 : i32
    %c0_i32_0 = arith.constant 0 : i32
    %c0_i32_1 = arith.constant 0 : i32
    return %c0_i32, %c0_i32_0 : i32, i32
  }
  func.func @transform_3(%arg0: i32) -> (i32, i32) {
    %c0_i32 = arith.constant 0 : i32
    %c0_i32_0 = arith.constant 0 : i32
    %c0_i32_1 = arith.constant 0 : i32
    return %c0_i32, %c0_i32_0 : i32, i32
  }
  func.func @transform_4(%arg0: i32) -> (i32, i32) {
    %c0_i32 = arith.constant 0 : i32
    %c0_i32_0 = arith.constant 0 : i32
    return %arg0, %c0_i32 : i32, i32
  }
}

</mosaic_0001>

<bundles_post_ra>
// kernel: tpu_custom_call.1
= control target key start
LH: loop header
LB: loop body
LE: loop exit
PB: predicated region body
PF: predicated region fallthrough
CT: control target
= control target key end

     0   :  { %9 = vsyncpa [#allocation4], 0  ;;  %s4970_s0 = inlined_call_operand.hbm [shape: bf16[2,48,256], index: 0, kind: input, shape index: {}]   ;;  %s4971_s1 = inlined_call_operand.hbm [shape: bf16[24,48], index: 1, kind: input, shape index: {}]   ;;  %s4972_s2 = inlined_call_operand.hbm [shape: bf16[256,3072], index: 2, kind: input, shape index: {}]   ;;  %s4973_s3 = inlined_call_operand.hbm [shape: f32[1,128], index: 3, kind: input, shape index: {}]   ;;  %s4974_s4 = inlined_call_operand.hbm [shape: f32[2,128], index: 4, kind: output, shape index: {}]  }
   0x1   :  { %10 = vsyncpa [#allocation7], 0 }
   0x2   :  { %11 = vsyncpa [#allocation10], 0 }
   0x3   :  { %12 = vsyncpa [#allocation5], 0  ;;  %s4709_s15 = smov [#allocation6]  }
   0x4   :  { %s30_s16 = sshll.u32 %s4709_s15, 4  ;;  %s31_s16 = int_to_ptr.vmem [resolvable:$true] %s30_s16 }
   0x5   :  { %s4609_s17 = scalar_lea.vmem %s31_s16, 192  ;;  %p4614_p1 = scmp.lt.s32.totalorder %s31_s16, %s31_s16 }
   0x6   :  { %p4610_p0 = scmp.ne.s32.totalorder %s31_s16, %s4609_s17  ;;  %p4615_p2 = scmp.lt.s32.totalorder %s4609_s17, %s4609_s17 }
   0x8   :  { %p4616_p3 = por %p4615_p2, %p4614_p1 }
   0xa   :  { %p4617_p4 = pnand %p4616_p3, %p4610_p0 }
   0xc   :  { %4620 = shalt.err (!%p4617_p4)
}
   0xd   :  { %s4710_s18 = smov 64   ;;  %s4711_s19 = smov 4  }
   0xe   :  { %36 = dma.hbm_to_vmem [thread:$0]  %s4971_s1, 192, %s31_s16, [#allocation7], %s4710_s18, %s4710_s18, %s4711_s19  }
   0xf   :  { %s4712_s22 = smov [#allocation3]  }
  0x10   :  { %s18_s23 = sshll.u32 %s4712_s22, 4  ;;  %s19_s23 = int_to_ptr.vmem [resolvable:$true] %s18_s23 }
  0x11   :  { %s4629_s24 = scalar_lea.vmem %s19_s23, 1536  ;;  %p4634_p6 = scmp.lt.s32.totalorder %s19_s23, %s19_s23 }
  0x12   :  { %p4630_p5 = scmp.ne.s32.totalorder %s19_s23, %s4629_s24  ;;  %p4635_p7 = scmp.lt.s32.totalorder %s4629_s24, %s4629_s24 }
  0x14   :  { %p4636_p8 = por %p4635_p7, %p4634_p6 }
  0x16   :  { %p4637_p9 = pnand %p4636_p8, %p4630_p5 }
  0x18   :  { %4640 = shalt.err (!%p4637_p9)
}
  0x19   :  { %s4713_s25 = smov 128   ;;  %s4714_s26 = smov 8  }
  0x1a   :  { %24 = dma.hbm_to_vmem [thread:$0]  %s4970_s0, 1536, %s19_s23, [#allocation4], %s4713_s25, %s4713_s25, %s4714_s26  }
  0x1b   :  { %s4715_s29 = smov [#allocation8]  }
  0x1c   :  { %s42_s30 = sshll.u32 %s4715_s29, 4  ;;  %s43_s30 = int_to_ptr.vmem [resolvable:$true] %s42_s30 }
  0x1d   :  { %s4649_s1 = scalar_lea.vmem %s43_s30, 49152  ;;  %p4654_p11 = scmp.lt.s32.totalorder %s43_s30, %s43_s30 }
  0x1e   :  { %p4650_p10 = scmp.ne.s32.totalorder %s43_s30, %s4649_s1  ;;  %p4655_p12 = scmp.lt.s32.totalorder %s4649_s1, %s4649_s1 }
  0x20   :  { %p4656_p13 = por %p4655_p12, %p4654_p11 }
  0x22   :  { %p4657_p0 = pnand %p4656_p13, %p4650_p10 }
  0x24   :  { %4660 = shalt.err (!%p4657_p0)
}
  0x25   :  { %s4716_s5 = smov 1536   ;;  %s4717_s6 = smov 96  }
  0x26   :  { %48 = dma.hbm_to_vmem [thread:$0]  %s4972_s2, 49152, %s43_s30, [#allocation7], %s4716_s5, %s4716_s5, %s4717_s6  }
  0x27   :  { %s4718_s9 = smov [#allocation9]  }
  0x28   :  { %s55_s10 = sshll.u32 %s4718_s9, 4  ;;  %s56_s10 = int_to_ptr.vmem [resolvable:$true] %s55_s10 }
  0x29   :  { %s4669_s0 = scalar_lea.vmem %s56_s10, 16  ;;  %s4673_s11 = scalar_lea.vmem %s56_s10, 32 }
  0x2a   :  { %p4670_p1 = scmp.ne.s32.totalorder %s56_s10, %s4669_s0  ;;  %p4674_p2 = scmp.lt.s32.totalorder %s56_s10, %s56_s10 }
  0x2b   :  { %p4675_p3 = scmp.lt.s32.totalorder %s4673_s11, %s4669_s0 }
  0x2d   :  { %p4676_p4 = por %p4675_p3, %p4674_p2 }
  0x2f   :  { %p4677_p5 = pnand %p4676_p4, %p4670_p1 }
  0x31   :  { %4680 = shalt.err (!%p4677_p5)
}
  0x32   :  { %58 = dma.hbm_to_vmem [thread:$0]  %s4973_s3, 16, %s56_s10, [#allocation10]  }
  0x33   :  { %4701 = dma.done.wait [#allocation4], 1536  }
  0x34   :  { %4702 = vsyncadd [#allocation4], 4294965760 }
  0x35   :  { %4703 = dma.done.wait [#allocation7], 49344  }
  0x36   :  { %4704 = vsyncadd [#allocation7], 4294917952 }
  0x37   :  { %4705 = dma.done.wait [#allocation10], 16  }
  0x38   :  { %4706 = vsyncadd [#allocation10], 4294967280  ;;  %v4719_v0 = vmov 0   ;;  %v4581_v1 = vld [vmem:[#allocation3 + $0x24] ss:$8 sps:$4 sm:$0xff]   ;;  %v498_v15 = vld [vmem:[#allocation8 + $0x548] sm:$0xff] }
  0x39   :  { %158 = vmatprep.mubr.bf16.mxu0 %v4719_v0  ;;  %275 = vmatprep.mubr.bf16.mxu1 %v4719_v0  ;;  %v4583_v2 = vld [vmem:[#allocation3 + $0x20] ss:$8 sps:$4 sm:$0xff]   ;;  %v4584_v3 = vld [vmem:[#allocation3 + $0x14] ss:$8 sps:$4 sm:$0xff]   ;;  %v4586_v4 = vld [vmem:[#allocation3 + $0x10] ss:$8 sps:$4 sm:$0xff]  }
  0x3a   :  { %136 = vmatprep.subr.bf16.mxu0 %v4581_v1  ;;  %v4587_v5 = vld [vmem:[#allocation3 + $0x4] ss:$8 sps:$4 sm:$0xff]   ;;  %v4591_v6 = vld [vmem:[#allocation3 + $0x54] ss:$8 sps:$4 sm:$0xff]   ;;  %v4593_v7 = vld [vmem:[#allocation3 + $0x50] ss:$8 sps:$4 sm:$0xff]  }
  0x3b   :  { %137 = vmatpush1.bf16.msra.mxu0 %v4583_v2  ;;  %v4589_v8 = vld [vmem:[#allocation3] ss:$8 sps:$4 sm:$0xff]   ;;  %253 = vmatprep.subr.bf16.mxu1 %v4591_v6  ;;  %v4594_v9 = vld [vmem:[#allocation3 + $0x44] ss:$8 sps:$4 sm:$0xff]   ;;  %v4597_v12 = vld [vmem:[#allocation3 + $0x34] ss:$8 sps:$4 sm:$0xff]  }
  0x3c   :  { %138 = vmatprep.subr.bf16.mxu0 %v4584_v3  ;;  %v4590_v10 = vld [vmem:[#allocation6] sm:$0xff]   ;;  %254 = vmatpush1.bf16.msra.mxu1 %v4593_v7  ;;  %v497_v13 = vld [vmem:[#allocation8 + $0x540] sm:$0xff]  ;;  %v510_v16 = vld [vmem:[#allocation8 + $0x5a8] sm:$0xff]  ;;  %vm119_vm0 = vcmask 392192   ;;  %s4721_s2 = smov [#allocation11]   ;;  %vm4122_vm1 = vcmask 1040384  }
  0x3d   :  { %v4596_v11 = vld [vmem:[#allocation3 + $0x40] ss:$8 sps:$4 sm:$0xff]   ;;  %255 = vmatprep.subr.bf16.mxu1 %v4594_v9  ;;  %v509_v14 = vld [vmem:[#allocation8 + $0x5a0] sm:$0xff]  ;;  %v4343_v23 = vcombine.high %v498_v15, %v510_v16  ;;  %v474_v24 = vld [vmem:[#allocation8 + $0x488] sm:$0xff]  ;;  %v4342_v29 = vcombine.low %v498_v15, %v510_v16  ;;  %s4131_s3 = sshll.u32 %s4721_s2, 4  ;;  %s4132_s3 = int_to_ptr.vmem [resolvable:$true] %s4131_s3 }
  0x3e   :  { %v4340_v17 = vcombine.low %v497_v13, %v509_v14  ;;  %v4341_v18 = vcombine.high %v497_v13, %v509_v14  ;;  %v473_v19 = vld [vmem:[#allocation8 + $0x480] sm:$0xff]  ;;  %v486_v25 = vld [vmem:[#allocation8 + $0x4e8] sm:$0xff]  ;;  %v4600_v34 = vld [vmem:[#allocation6 + $0x8] ss:$0 sps:$4 sm:$0xff]   ;;  %s4681_s14 = scalar_lea.vmem %s4132_s3, 32  ;;  %p4686_p7 = scmp.lt.s32.totalorder %s4132_s3, %s4132_s3 }
  0x3f   :  { %139 = vmatpush1.bf16.msra.mxu0 %v4586_v4  ;;  %v485_v20 = vld [vmem:[#allocation8 + $0x4e0] sm:$0xff]  ;;  %v4319_v30 = vcombine.high %v474_v24, %v486_v25  ;;  %v450_v35 = vld [vmem:[#allocation8 + $0x3c8] sm:$0xff]  ;;  %v4318_v38 = vcombine.low %v474_v24, %v486_v25  ;;  %p4682_p6 = scmp.ne.s32.totalorder %s4132_s3, %s4681_s14  ;;  %p4687_p8 = scmp.lt.s32.totalorder %s4681_s14, %s4681_s14 }
  0x40   :  { %140 = vmatprep.subr.bf16.mxu0 %v4587_v5  ;;  %256 = vmatpush1.bf16.msra.mxu1 %v4596_v11  ;;  %v4599_v21 = vld [vmem:[#allocation3 + $0x30] ss:$8 sps:$4 sm:$0xff]   ;;  %v4317_v22 = vcombine.high %v473_v19, %v485_v20  ;;  %v4316_v28 = vcombine.low %v473_v19, %v485_v20 }
  0x41   :  { %257 = vmatprep.subr.bf16.mxu1 %v4597_v12  ;;  %v449_v26 = vld [vmem:[#allocation8 + $0x3c0] sm:$0xff]  ;;  %v462_v36 = vld [vmem:[#allocation8 + $0x428] sm:$0xff]  ;;  %p4688_p9 = por %p4687_p8, %p4686_p7 }
  0x42   :  { %v461_v27 = vld [vmem:[#allocation8 + $0x420] sm:$0xff]  ;;  %v4295_v40 = vcombine.high %v450_v35, %v462_v36  ;;  %v426_v43 = vld [vmem:[#allocation8 + $0x308] sm:$0xff]  ;;  %v4294_v46 = vcombine.low %v450_v35, %v462_v36 }
  0x43   :  { %141 = vmatpush1.bf16.msra.mxu0 %v4589_v8  ;;  %v4293_v31 = vcombine.high %v449_v26, %v461_v27  ;;  %v425_v32 = vld [vmem:[#allocation8 + $0x300] sm:$0xff]  ;;  %v4292_v37 = vcombine.low %v449_v26, %v461_v27  ;;  %v438_v44 = vld [vmem:[#allocation8 + $0x368] sm:$0xff]  ;;  %p4689_p10 = pnand %p4688_p9, %p4682_p6 }
  0x44   :  { %2663 = vmatprep.subr.bf16.mxu0 %v4341_v18  ;;  %258 = vmatpush1.bf16.msra.mxu1 %v4599_v21  ;;  %v437_v33 = vld [vmem:[#allocation8 + $0x360] sm:$0xff]  ;;  %v4271_v48 = vcombine.high %v426_v43, %v438_v44  ;;  %v402_v51 = vld [vmem:[#allocation8 + $0x248] sm:$0xff]  ;;  %v4270_v54 = vcombine.low %v426_v43, %v438_v44 }
  0x45   :  { %2718 = vmatprep.subr.bf16.mxu1 %v4343_v23  ;;  %v4269_v39 = vcombine.high %v425_v32, %v437_v33  ;;  %v401_v41 = vld [vmem:[#allocation8 + $0x240] sm:$0xff]  ;;  %v4268_v45 = vcombine.low %v425_v32, %v437_v33  ;;  %v414_v52 = vld [vmem:[#allocation8 + $0x2a8] sm:$0xff] }
  0x46   :  { %4150 = vmatmul.mubr.msk.bf16.vlgmr.msra.gmra.mxu0 %vm119_vm0, %v4590_v10  ;;  %v413_v42 = vld [vmem:[#allocation8 + $0x2a0] sm:$0xff]  ;;  %v4247_v56 = vcombine.high %v402_v51, %v414_v52  ;;  %v378_v59 = vld [vmem:[#allocation8 + $0x188] sm:$0xff]  ;;  %v4246_v62 = vcombine.low %v402_v51, %v414_v52 }
  0x47   :  { %168 = vmatprep.mubr.bf16.mxu0 %v4719_v0  ;;  %2664 = vmatpush1.bf16.msra.mxu0 %v4340_v17  ;;  %v4245_v47 = vcombine.high %v401_v41, %v413_v42  ;;  %v377_v49 = vld [vmem:[#allocation8 + $0x180] sm:$0xff]  ;;  %v4244_v53 = vcombine.low %v401_v41, %v413_v42  ;;  %v390_v60 = vld [vmem:[#allocation8 + $0x1e8] sm:$0xff] }
  0x48   :  { %2665 = vmatprep.subr.bf16.mxu0 %v4317_v22  ;;  %4161 = vmatmul.mubr.msk.bf16.vlgmr.msra.gmra.mxu1 %vm119_vm0, %v4590_v10  ;;  %v389_v50 = vld [vmem:[#allocation8 + $0x1e0] sm:$0xff]  ;;  %v354_v3 = vld [vmem:[#allocation8 + $0xc8] sm:$0xff]  ;;  %v4222_v6 = vcombine.low %v378_v59, %v390_v60 }
  0x49   :  { %285 = vmatprep.mubr.bf16.mxu1 %v4719_v0  ;;  %2719 = vmatpush1.bf16.msra.mxu1 %v4342_v29  ;;  %v4221_v55 = vcombine.high %v377_v49, %v389_v50  ;;  %v353_v57 = vld [vmem:[#allocation8 + $0xc0] sm:$0xff]  ;;  %v4220_v61 = vcombine.low %v377_v49, %v389_v50  ;;  %v4223_v0 = vcombine.high %v378_v59, %v390_v60  ;;  %v366_v4 = vld [vmem:[#allocation8 + $0x128] sm:$0xff] }
  0x4a   :  { %2720 = vmatprep.subr.bf16.mxu1 %v4319_v30  ;;  %v365_v58 = vld [vmem:[#allocation8 + $0x120] sm:$0xff]  ;;  %v4199_v8 = vcombine.high %v354_v3, %v366_v4  ;;  %v330_v11 = vld [vmem:[#allocation8 + $0x8] sm:$0xff]  ;;  %v4198_v14 = vcombine.low %v354_v3, %v366_v4 }
  0x4b   :  { %2666 = vmatpush1.bf16.msra.mxu0 %v4316_v28  ;;  %v4197_v63 = vcombine.high %v353_v57, %v365_v58  ;;  %v329_v1 = vld [vmem:[#allocation8] sm:$0xff]  ;;  %v4196_v5 = vcombine.low %v353_v57, %v365_v58  ;;  %v342_v12 = vld [vmem:[#allocation8 + $0x68] sm:$0xff] }
  0x4c   :  { %2667 = vmatprep.subr.bf16.mxu0 %v4293_v31  ;;  %v341_v2 = vld [vmem:[#allocation8 + $0x60] sm:$0xff]  ;;  %v4175_v16 = vcombine.high %v330_v11, %v342_v12  ;;  %v690_v19 = vld [vmem:[#allocation8 + $0xb48] sm:$0xff]  ;;  %v4174_v22 = vcombine.low %v330_v11, %v342_v12 }
  0x4d   :  { %2721 = vmatpush1.bf16.msra.mxu1 %v4318_v38  ;;  %v4173_v7 = vcombine.high %v329_v1, %v341_v2  ;;  %v689_v9 = vld [vmem:[#allocation8 + $0xb40] sm:$0xff]  ;;  %v4172_v13 = vcombine.low %v329_v1, %v341_v2  ;;  %v702_v20 = vld [vmem:[#allocation8 + $0xba8] sm:$0xff] }
  0x4e   :  { %4151 = vmatmul.mubr.msk.bf16.gmra.mxu0 %vm119_vm0, %v4600_v34  ;;  %2722 = vmatprep.subr.bf16.mxu1 %v4295_v40  ;;  %v701_v10 = vld [vmem:[#allocation8 + $0xba0] sm:$0xff]  ;;  %v4535_v24 = vcombine.high %v690_v19, %v702_v20  ;;  %v666_v27 = vld [vmem:[#allocation8 + $0xa88] sm:$0xff]  ;;  %v4534_v30 = vcombine.low %v690_v19, %v702_v20  ;;  %v512_v19 = vld [vmem:[#allocation8 + $0x5b8] sm:$0xff] }
  0x4f   :  { %2668 = vmatpush1.bf16.msra.mxu0 %v4292_v37  ;;  %v4533_v15 = vcombine.high %v689_v9, %v701_v10  ;;  %v665_v17 = vld [vmem:[#allocation8 + $0xa80] sm:$0xff]  ;;  %v4532_v21 = vcombine.low %v689_v9, %v701_v10  ;;  %v678_v28 = vld [vmem:[#allocation8 + $0xae8] sm:$0xff] }
  0x50   :  { %2669 = vmatprep.subr.bf16.mxu0 %v4269_v39  ;;  %4162 = vmatmul.mubr.msk.bf16.gmra.mxu1 %vm119_vm0, %v4600_v34  ;;  %v677_v18 = vld [vmem:[#allocation8 + $0xae0] sm:$0xff]  ;;  %v4511_v32 = vcombine.high %v666_v27, %v678_v28  ;;  %v642_v35 = vld [vmem:[#allocation8 + $0x9c8] sm:$0xff]  ;;  %v4510_v38 = vcombine.low %v666_v27, %v678_v28 }
  0x51   :  { %2723 = vmatpush1.bf16.msra.mxu1 %v4294_v46  ;;  %v4509_v23 = vcombine.high %v665_v17, %v677_v18  ;;  %v641_v25 = vld [vmem:[#allocation8 + $0x9c0] sm:$0xff]  ;;  %v4508_v29 = vcombine.low %v665_v17, %v677_v18  ;;  %v654_v36 = vld [vmem:[#allocation8 + $0xa28] sm:$0xff]  ;;  %v500_v17 = vld [vmem:[#allocation8 + $0x558] sm:$0xff] }
  0x52   :  { %2724 = vmatprep.subr.bf16.mxu1 %v4271_v48  ;;  %v653_v26 = vld [vmem:[#allocation8 + $0xa20] sm:$0xff]  ;;  %v4487_v40 = vcombine.high %v642_v35, %v654_v36  ;;  %v618_v43 = vld [vmem:[#allocation8 + $0x908] sm:$0xff]  ;;  %v4486_v46 = vcombine.low %v642_v35, %v654_v36  ;;  %v488_v35 = vld [vmem:[#allocation8 + $0x4f8] sm:$0xff] }
  0x53   :  { %2670 = vmatpush1.bf16.msra.mxu0 %v4268_v45  ;;  %v4485_v31 = vcombine.high %v641_v25, %v653_v26  ;;  %v617_v33 = vld [vmem:[#allocation8 + $0x900] sm:$0xff]  ;;  %v4484_v37 = vcombine.low %v641_v25, %v653_v26  ;;  %v630_v44 = vld [vmem:[#allocation8 + $0x968] sm:$0xff] }
  0x54   :  { %2671 = vmatprep.subr.bf16.mxu0 %v4245_v47  ;;  %v629_v34 = vld [vmem:[#allocation8 + $0x960] sm:$0xff]  ;;  %v4463_v48 = vcombine.high %v618_v43, %v630_v44  ;;  %v594_v51 = vld [vmem:[#allocation8 + $0x848] sm:$0xff] }
  0x55   :  { %2725 = vmatpush1.bf16.msra.mxu1 %v4270_v54  ;;  %v4461_v39 = vcombine.high %v617_v33, %v629_v34  ;;  %v593_v41 = vld [vmem:[#allocation8 + $0x840] sm:$0xff]  ;;  %v4460_v45 = vcombine.low %v617_v33, %v629_v34  ;;  %v606_v52 = vld [vmem:[#allocation8 + $0x8a8] sm:$0xff]  ;;  %v4462_v54 = vcombine.low %v618_v43, %v630_v44  ;;  %v487_v33 = vld [vmem:[#allocation8 + $0x4f0] sm:$0xff] }
  0x56   :  { %2726 = vmatprep.subr.bf16.mxu1 %v4247_v56  ;;  %v605_v42 = vld [vmem:[#allocation8 + $0x8a0] sm:$0xff]  ;;  %v4439_v56 = vcombine.high %v594_v51, %v606_v52  ;;  %v570_v57 = vld [vmem:[#allocation8 + $0x788] sm:$0xff]  ;;  %v4438_v60 = vcombine.low %v594_v51, %v606_v52  ;;  %v476_v34 = vld [vmem:[#allocation8 + $0x498] sm:$0xff] }
  0x57   :  { %2672 = vmatpush1.bf16.msra.mxu0 %v4244_v53  ;;  %v4437_v47 = vcombine.high %v593_v41, %v605_v42  ;;  %v569_v49 = vld [vmem:[#allocation8 + $0x780] sm:$0xff]  ;;  %v4436_v53 = vcombine.low %v593_v41, %v605_v42  ;;  %v582_v58 = vld [vmem:[#allocation8 + $0x7e8] sm:$0xff]  ;;  %v4323_v44 = vcombine.high %v476_v34, %v488_v35 }
  0x58   :  { %2673 = vmatprep.subr.bf16.mxu0 %v4221_v55  ;;  %v581_v50 = vld [vmem:[#allocation8 + $0x7e0] sm:$0xff]  ;;  %v546_v1 = vld [vmem:[#allocation8 + $0x6c8] sm:$0xff] }
  0x59   :  { %2727 = vmatpush1.bf16.msra.mxu1 %v4246_v62  ;;  %v4413_v55 = vcombine.high %v569_v49, %v581_v50  ;;  %v4412_v59 = vcombine.low %v569_v49, %v581_v50  ;;  %v4414_v62 = vcombine.low %v570_v57, %v582_v58  ;;  %v558_v3 = vld [vmem:[#allocation8 + $0x728] sm:$0xff]  ;;  %v452_v49 = vld [vmem:[#allocation8 + $0x3d8] sm:$0xff] }
  0x5a   :  { %2728 = vmatprep.subr.bf16.mxu1 %v4223_v0  ;;  %v557_v0 = vld [vmem:[#allocation8 + $0x720] sm:$0xff]  ;;  %v522_v9 = vld [vmem:[#allocation8 + $0x608] sm:$0xff]  ;;  %v464_v50 = vld [vmem:[#allocation8 + $0x438] sm:$0xff] }
  0x5b   :  { %2674 = vmatpush1.bf16.msra.mxu0 %v4220_v61  ;;  %v4415_v61 = vcombine.high %v570_v57, %v582_v58  ;;  %v534_v11 = vld [vmem:[#allocation8 + $0x668] sm:$0xff] }
  0x5c   :  { %2675 = vmatprep.subr.bf16.mxu0 %v4197_v63  ;;  %v545_v63 = vld [vmem:[#allocation8 + $0x6c0] sm:$0xff] }
  0x5d   :  { %2729 = vmatpush1.bf16.msra.mxu1 %v4222_v6  ;;  %v4389_v2 = vcombine.high %v545_v63, %v557_v0  ;;  %v4388_v4 = vcombine.low %v545_v63, %v557_v0  ;;  %v4391_v6 = vcombine.high %v546_v1, %v558_v3  ;;  %v439_v0 = vld [vmem:[#allocation8 + $0x370] sm:$0xff] }
  0x5e   :  { %2730 = vmatprep.subr.bf16.mxu1 %v4199_v8  ;;  %v533_v8 = vld [vmem:[#allocation8 + $0x660] sm:$0xff] }
  0x5f   :  { %2676 = vmatpush1.bf16.msra.mxu0 %v4196_v5  ;;  %v4390_v5 = vcombine.low %v546_v1, %v558_v3  ;;  %v428_v1 = vld [vmem:[#allocation8 + $0x318] sm:$0xff] }
  0x60   :  { %2677 = vmatprep.subr.bf16.mxu0 %v4173_v7  ;;  %v521_v7 = vld [vmem:[#allocation8 + $0x600] sm:$0xff] }
  0x61   :  { %2731 = vmatpush1.bf16.msra.mxu1 %v4198_v14  ;;  %v4365_v10 = vcombine.high %v521_v7, %v533_v8  ;;  %v4364_v12 = vcombine.low %v521_v7, %v533_v8  ;;  %v4367_v14 = vcombine.high %v522_v9, %v534_v11 }
  0x62   :  { %2732 = vmatprep.subr.bf16.mxu1 %v4175_v16  ;;  %v511_v16 = vld [vmem:[#allocation8 + $0x5b0] sm:$0xff] }
  0x63   :  { %2678 = vmatpush1.bf16.msra.mxu0 %v4172_v13  ;;  %v4366_v13 = vcombine.low %v522_v9, %v534_v11 }
  0x64   :  { %2679 = vmatprep.subr.bf16.mxu0 %v4533_v15  ;;  %v499_v15 = vld [vmem:[#allocation8 + $0x550] sm:$0xff] }
  0x65   :  { %2733 = vmatpush1.bf16.msra.mxu1 %v4174_v22  ;;  %v4345_v18 = vcombine.high %v499_v15, %v511_v16  ;;  %v4344_v20 = vcombine.low %v499_v15, %v511_v16  ;;  %v4347_v22 = vcombine.high %v500_v17, %v512_v19 }
  0x66   :  { %2734 = vmatprep.subr.bf16.mxu1 %v4535_v24 }
  0x67   :  { %2680 = vmatpush2.bf16.msra.mxu0 %v4532_v21  ;;  %v4346_v21 = vcombine.low %v500_v17, %v512_v19 }
  0x68   :  { %2681 = vmatprep.subr.bf16.mxu0 %v4509_v23 }
  0x69   :  { %2735 = vmatpush2.bf16.msra.mxu1 %v4534_v30 }
  0x6a   :  { %2736 = vmatprep.subr.bf16.mxu1 %v4511_v32 }
  0x6b   :  { %2682 = vmatpush2.bf16.msra.mxu0 %v4508_v29  ;;  %v475_v29 = vld [vmem:[#allocation8 + $0x490] sm:$0xff] }
  0x6c   :  { %2683 = vmatprep.subr.bf16.mxu0 %v4485_v31  ;;  %v4321_v43 = vcombine.high %v475_v29, %v487_v33 }
  0x6d   :  { %2737 = vmatpush2.bf16.msra.mxu1 %v4510_v38 }
  0x6e   :  { %2738 = vmatprep.subr.bf16.mxu1 %v4487_v40 }
  0x6f   :  { %2684 = vmatpush2.bf16.msra.mxu0 %v4484_v37 }
  0x70   :  { %2685 = vmatprep.subr.bf16.mxu0 %v4461_v39 }
  0x71   :  { %2739 = vmatpush2.bf16.msra.mxu1 %v4486_v46 }
  0x72   :  { %2740 = vmatprep.subr.bf16.mxu1 %v4463_v48  ;;  %v463_v48 = vld [vmem:[#allocation8 + $0x430] sm:$0xff] }
  0x73   :  { %2686 = vmatpush2.bf16.msra.mxu0 %v4460_v45  ;;  %v451_v45 = vld [vmem:[#allocation8 + $0x3d0] sm:$0xff] }
  0x74   :  { %2687 = vmatprep.subr.bf16.mxu0 %v4437_v47  ;;  %v4297_v58 = vcombine.high %v451_v45, %v463_v48 }
  0x75   :  { %2741 = vmatpush2.bf16.msra.mxu1 %v4462_v54 }
  0x76   :  { %2742 = vmatprep.subr.bf16.mxu1 %v4439_v56  ;;  %v4322_v56 = vcombine.low %v476_v34, %v488_v35  ;;  %v368_v34 = vld [vmem:[#allocation8 + $0x138] sm:$0xff] }
  0x77   :  { %2688 = vmatpush2.bf16.msra.mxu0 %v4436_v53 }
  0x78   :  { %2689 = vmatprep.subr.bf16.mxu0 %v4413_v55  ;;  %v4320_v55 = vcombine.low %v475_v29, %v487_v33  ;;  %v355_v29 = vld [vmem:[#allocation8 + $0xd0] sm:$0xff]  ;;  %v356_v33 = vld [vmem:[#allocation8 + $0xd8] sm:$0xff] }
  0x79   :  { %2743 = vmatpush2.bf16.msra.mxu1 %v4438_v60  ;;  %v427_v60 = vld [vmem:[#allocation8 + $0x310] sm:$0xff] }
  0x7a   :  { %2744 = vmatprep.subr.bf16.mxu1 %v4415_v61  ;;  %v4273_v8 = vcombine.high %v427_v60, %v439_v0 }
  0x7b   :  { %2690 = vmatpush2.bf16.msra.mxu0 %v4412_v59  ;;  %v4299_v59 = vcombine.high %v452_v49, %v464_v50 }
  0x7c   :  { %2691 = vmatprep.subr.bf16.mxu0 %v4389_v2  ;;  %v440_v2 = vld [vmem:[#allocation8 + $0x378] sm:$0xff] }
  0x7d   :  { %2745 = vmatpush2.bf16.msra.mxu1 %v4414_v62  ;;  %v4275_v9 = vcombine.high %v428_v1, %v440_v2  ;;  %v4274_v19 = vcombine.low %v428_v1, %v440_v2  ;;  %v643_v2 = vld [vmem:[#allocation8 + $0x9d0] sm:$0xff] }
  0x7e   :  { %2746 = vmatprep.subr.bf16.mxu1 %v4391_v6  ;;  %v4298_v6 = vcombine.low %v452_v49, %v464_v50  ;;  %v691_v49 = vld [vmem:[#allocation8 + $0xb50] sm:$0xff] }
  0x7f   :  { %2692 = vmatpush2.bf16.msra.mxu0 %v4388_v4  ;;  %v703_v50 = vld [vmem:[#allocation8 + $0xbb0] sm:$0xff] }
  0x80   :  { %2693 = vmatprep.subr.bf16.mxu0 %v4365_v10  ;;  %v403_v10 = vld [vmem:[#allocation8 + $0x250] sm:$0xff] }
  0x81   :  { %2747 = vmatpush2.bf16.msra.mxu1 %v4390_v5  ;;  %v4296_v5 = vcombine.low %v451_v45, %v463_v48 }
  0x82   :  { %2748 = vmatprep.subr.bf16.mxu1 %v4367_v14  ;;  %v416_v14 = vld [vmem:[#allocation8 + $0x2b8] sm:$0xff] }
  0x83   :  { %2694 = vmatpush2.bf16.msra.mxu0 %v4364_v12  ;;  %v415_v12 = vld [vmem:[#allocation8 + $0x2b0] sm:$0xff] }
  0x84   :  { %2773 = vmatprep.subr.bf16.mxu0 %v4345_v18  ;;  %v4272_v18 = vcombine.low %v427_v60, %v439_v0  ;;  %v668_v60 = vld [vmem:[#allocation8 + $0xa98] sm:$0xff] }
  0x85   :  { %2749 = vmatpush2.bf16.msra.mxu1 %v4366_v13  ;;  %v404_v13 = vld [vmem:[#allocation8 + $0x258] sm:$0xff] }
  0x86   :  { %2828 = vmatprep.subr.bf16.mxu1 %v4347_v22  ;;  %v379_v22 = vld [vmem:[#allocation8 + $0x190] sm:$0xff] }
 0x106   :  { %v160_v23 = vpop.f32.mrf.mxu0 }
 0x107   :  { %v177_v36 = vmax.f32 %v160_v23, 0.0 }
 0x108   :  { %v162_v24 = vpop.f32.mrf.mxu0  ;;  %v277_v26 = vpop.f32.mrf.mxu1 }
 0x109   :  { %v178_v30 = vmax.f32 %v162_v24, 0.0  ;;  %v294_v52 = vmax.f32 %v277_v26, 0.0  ;;  %v391_v24 = vld [vmem:[#allocation8 + $0x1f0] sm:$0xff]  ;;  %v392_v26 = vld [vmem:[#allocation8 + $0x1f8] sm:$0xff] }
 0x10a   :  { %v164_v25 = vpop.f32.mrf.mxu0  ;;  %v279_v32 = vpop.f32.mrf.mxu1  ;;  %v4224_v35 = vcombine.low %v379_v22, %v391_v24 }
 0x10b   :  { %v179_v27 = vmax.f32 %v164_v25, 0.0  ;;  %v295_v39 = vmax.f32 %v279_v32, 0.0  ;;  %v380_v25 = vld [vmem:[#allocation8 + $0x198] sm:$0xff]  ;;  %v367_v32 = vld [vmem:[#allocation8 + $0x130] sm:$0xff] }
 0x10c   :  { %v166_v28 = vpop.f32.mrf.mxu0  ;;  %v4765_v40 = vpop.f32.mrf.mxu1  ;;  %v4200_v45 = vcombine.low %v355_v29, %v367_v32 }
 0x10d   :  { %v180_v31 = vmax.f32 %v166_v28, 0.0  ;;  %v4767_v41 = vpack.c.bf16 %v179_v27, %v177_v36  ;;  %v296_v16 = vmax.f32 %v4765_v40, 0.0  ;;  %v4248_v27 = vcombine.low %v403_v10, %v415_v12  ;;  %v331_v40 = vld [vmem:[#allocation8 + $0x10] sm:$0xff] }
 0x10e   :  { %v170_v37 = vpop.f32.mrf.mxu0  ;;  %v283_v47 = vpop.f32.mrf.mxu1  ;;  %v4250_v28 = vcombine.low %v404_v13, %v416_v14  ;;  %v4226_v36 = vcombine.low %v380_v25, %v392_v26 }
 0x10f   :  { %v4763_v38 = vpack.c.bf16 %v180_v31, %v178_v30  ;;  %v181_v51 = vmax.f32 %v170_v37, 0.0  ;;  %v297_v62 = vmax.f32 %v283_v47, 0.0  ;;  %v4225_v30 = vcombine.high %v379_v22, %v391_v24  ;;  %v596_v22 = vld [vmem:[#allocation8 + $0x858] sm:$0xff] }
 0x110   :  { %v172_v42 = vpop.f32.mrf.mxu0  ;;  %v287_v57 = vpop.f32.mrf.mxu1  ;;  %v4227_v31 = vcombine.high %v380_v25, %v392_v26  ;;  %v4201_v37 = vcombine.high %v355_v29, %v367_v32  ;;  %v608_v24 = vld [vmem:[#allocation8 + $0x8b8] sm:$0xff]  ;;  %v571_v29 = vld [vmem:[#allocation8 + $0x790] sm:$0xff] }
 0x111   :  { %2695 = vmatprep.mubr.bf16.mxu0 %v4763_v38  ;;  %2750 = vmatprep.mubr.bf16.mxu1 %v4763_v38  ;;  %v182_v46 = vmax.f32 %v172_v42, 0.0  ;;  %v4777_v3 = vpack.c.bf16 %v294_v52, %v181_v51  ;;  %v298_v17 = vmax.f32 %v287_v57, 0.0  ;;  %v343_v42 = vld [vmem:[#allocation8 + $0x70] sm:$0xff]  ;;  %v692_v51 = vld [vmem:[#allocation8 + $0xb58] sm:$0xff] }
 0x112   :  { %2696 = vmatmul.mubr.bf16.vlgmr.msra.gmra.mxu0 %v4767_v41  ;;  %2751 = vmatmul.mubr.bf16.vlgmr.msra.gmra.mxu1 %v4767_v41  ;;  %v174_v53 = vpop.f32.mrf.mxu0  ;;  %v289_v63 = vpop.f32.mrf.mxu1  ;;  %v4177_v47 = vcombine.high %v331_v40, %v343_v42  ;;  %v704_v52 = vld [vmem:[#allocation8 + $0xbb8] sm:$0xff] }
 0x113   :  { %2774 = vmatpush1.bf16.msra.mxu0 %v4344_v20  ;;  %2829 = vmatpush1.bf16.msra.mxu1 %v4346_v21  ;;  %v4773_v54 = vpack.c.bf16 %v295_v39, %v182_v46  ;;  %v299_v4 = vmax.f32 %v289_v63, 0.0  ;;  %v4249_v20 = vcombine.high %v403_v10, %v415_v12  ;;  %v4251_v21 = vcombine.high %v404_v13, %v416_v14  ;;  %v619_v12 = vld [vmem:[#allocation8 + $0x910] sm:$0xff]  ;;  %v620_v14 = vld [vmem:[#allocation8 + $0x918] sm:$0xff] }
 0x114   :  { %2775 = vmatprep.subr.bf16.mxu0 %v4321_v43  ;;  %2830 = vmatprep.subr.bf16.mxu1 %v4323_v44  ;;  %v175_v61 = vpop.f32.mrf.mxu0  ;;  %v291_v7 = vpop.f32.mrf.mxu1  ;;  %v4786_v23 = vpack.c.bf16 %v298_v17, %v296_v16  ;;  %v4203_v39 = vcombine.high %v356_v33, %v368_v34  ;;  %v332_v43 = vld [vmem:[#allocation8 + $0x18] sm:$0xff]  ;;  %v4202_v46 = vcombine.low %v356_v33, %v368_v34  ;;  %v631_v13 = vld [vmem:[#allocation8 + $0x970] sm:$0xff] }
 0x115   :  { %2703 = vmatprep.mubr.bf16.mxu0 %v4773_v54  ;;  %2758 = vmatprep.mubr.bf16.mxu1 %v4773_v54  ;;  %v4779_v11 = vpack.c.bf16 %v299_v4, %v297_v62  ;;  %v344_v44 = vld [vmem:[#allocation8 + $0x78] sm:$0xff]  ;;  %v4176_v53 = vcombine.low %v331_v40, %v343_v42  ;;  %v4539_v57 = vcombine.high %v692_v51, %v704_v52  ;;  %v655_v4 = vld [vmem:[#allocation8 + $0xa30] sm:$0xff] }
 0x116   :  { %v292_v15 = vpop.f32.mrf.mxu1  ;;  %v4179_v48 = vcombine.high %v332_v43, %v344_v44  ;;  %v680_v61 = vld [vmem:[#allocation8 + $0xaf8] sm:$0xff]  ;;  %v4536_v62 = vcombine.low %v691_v49, %v703_v50  ;;  %v4538_v63 = vcombine.low %v692_v51, %v704_v52  ;;  %v4488_v16 = vcombine.low %v643_v2, %v655_v4 }
 0x117   :  { %2776 = vmatpush1.bf16.msra.mxu0 %v4320_v55  ;;  %2831 = vmatpush1.bf16.msra.mxu1 %v4322_v56  ;;  %v4178_v55 = vcombine.low %v332_v43, %v344_v44  ;;  %v4537_v56 = vcombine.high %v691_v49, %v703_v50  ;;  %v4515_v1 = vcombine.high %v668_v60, %v680_v61  ;;  %v632_v15 = vld [vmem:[#allocation8 + $0x978] sm:$0xff] }
 0x118   :  { %2777 = vmatprep.subr.bf16.mxu0 %v4297_v58  ;;  %2832 = vmatprep.subr.bf16.mxu1 %v4299_v59  ;;  %v667_v58 = vld [vmem:[#allocation8 + $0xa90] sm:$0xff]  ;;  %v4464_v25 = vcombine.low %v619_v12, %v631_v13  ;;  %v4466_v26 = vcombine.low %v620_v14, %v632_v15  ;;  %v584_v32 = vld [vmem:[#allocation8 + $0x7f8] sm:$0xff]  ;;  %v4442_v34 = vcombine.low %v596_v22, %v608_v24 }
 0x119   :  { %v679_v59 = vld [vmem:[#allocation8 + $0xaf0] sm:$0xff]  ;;  %v548_v40 = vld [vmem:[#allocation8 + $0x6d8] sm:$0xff] }
 0x11a   :  { %2704 = vmatmul.mubr.bf16.gmra.mxu0 %v4777_v3  ;;  %2759 = vmatmul.mubr.bf16.gmra.mxu1 %v4777_v3  ;;  %v4513_v0 = vcombine.high %v667_v58, %v679_v59  ;;  %v4512_v7 = vcombine.low %v667_v58, %v679_v59  ;;  %v560_v42 = vld [vmem:[#allocation8 + $0x738] sm:$0xff]  ;;  %v502_v58 = vld [vmem:[#allocation8 + $0x568] sm:$0xff] }
 0x11b   :  { %2778 = vmatpush1.bf16.msra.mxu0 %v4296_v5  ;;  %2833 = vmatpush1.bf16.msra.mxu1 %v4298_v6  ;;  %v644_v5 = vld [vmem:[#allocation8 + $0x9d8] sm:$0xff]  ;;  %v4394_v52 = vcombine.low %v548_v40, %v560_v42  ;;  %v514_v59 = vld [vmem:[#allocation8 + $0x5c8] sm:$0xff] }
 0x11c   :  { %2779 = vmatprep.subr.bf16.mxu0 %v4273_v8  ;;  %2834 = vmatprep.subr.bf16.mxu1 %v4275_v9  ;;  %v656_v6 = vld [vmem:[#allocation8 + $0xa38] sm:$0xff]  ;;  %v4514_v8 = vcombine.low %v668_v60, %v680_v61  ;;  %v4489_v9 = vcombine.high %v643_v2, %v655_v4  ;;  %v478_v2 = vld [vmem:[#allocation8 + $0x4a8] sm:$0xff] }
 0x11d   :  { %2711 = vmatprep.mubr.bf16.mxu0 %v4779_v11  ;;  %2766 = vmatprep.mubr.bf16.mxu1 %v4779_v11  ;;  %v4491_v10 = vcombine.high %v644_v5, %v656_v6  ;;  %v4490_v17 = vcombine.low %v644_v5, %v656_v6  ;;  %v524_v49 = vld [vmem:[#allocation8 + $0x618] sm:$0xff]  ;;  %v490_v4 = vld [vmem:[#allocation8 + $0x508] sm:$0xff]  ;;  %v4350_v6 = vcombine.low %v502_v58, %v514_v59 }
 0x11e   :  { %v536_v50 = vld [vmem:[#allocation8 + $0x678] sm:$0xff] }
 0x11f   :  { %2780 = vmatpush1.bf16.msra.mxu0 %v4272_v18  ;;  %2835 = vmatpush1.bf16.msra.mxu1 %v4274_v19  ;;  %v4465_v18 = vcombine.high %v619_v12, %v631_v13  ;;  %v4467_v19 = vcombine.high %v620_v14, %v632_v15  ;;  %v4370_v61 = vcombine.low %v524_v49, %v536_v50  ;;  %v454_v12 = vld [vmem:[#allocation8 + $0x3e8] sm:$0xff] }
 0x120   :  { %2781 = vmatprep.subr.bf16.mxu0 %v4249_v20  ;;  %2836 = vmatprep.subr.bf16.mxu1 %v4251_v21  ;;  %v595_v20 = vld [vmem:[#allocation8 + $0x850] sm:$0xff]  ;;  %v466_v13 = vld [vmem:[#allocation8 + $0x448] sm:$0xff]  ;;  %v4326_v15 = vcombine.low %v478_v2, %v490_v4 }
 0x121   :  { %v607_v21 = vld [vmem:[#allocation8 + $0x8b0] sm:$0xff] }
 0x122   :  { %2712 = vmatmul.mubr.bf16.gmra.mxu0 %v4786_v23  ;;  %2767 = vmatmul.mubr.bf16.gmra.mxu1 %v4786_v23  ;;  %v4440_v33 = vcombine.low %v595_v20, %v607_v21 }
 0x123   :  { %2782 = vmatpush1.bf16.msra.mxu0 %v4248_v27  ;;  %2837 = vmatpush1.bf16.msra.mxu1 %v4250_v28  ;;  %v4441_v27 = vcombine.high %v595_v20, %v607_v21  ;;  %v4443_v28 = vcombine.high %v596_v22, %v608_v24  ;;  %v430_v20 = vld [vmem:[#allocation8 + $0x328] sm:$0xff]  ;;  %v4302_v24 = vcombine.low %v454_v12, %v466_v13 }
 0x124   :  { %2805 = vmatprep.mubr.bf16.mxu0 %v4763_v38  ;;  %2860 = vmatprep.mubr.bf16.mxu1 %v4763_v38  ;;  %v442_v21 = vld [vmem:[#allocation8 + $0x388] sm:$0xff] }
 0x125   :  { %2783 = vmatprep.subr.bf16.mxu0 %v4225_v30  ;;  %2838 = vmatprep.subr.bf16.mxu1 %v4227_v31  ;;  %v583_v30 = vld [vmem:[#allocation8 + $0x7f0] sm:$0xff]  ;;  %v572_v31 = vld [vmem:[#allocation8 + $0x798] sm:$0xff] }
 0x126   :  { %v4416_v43 = vcombine.low %v571_v29, %v583_v30  ;;  %v4418_v44 = vcombine.low %v572_v31, %v584_v32 }
 0x127   :  { %2784 = vmatpush1.bf16.msra.mxu0 %v4224_v35  ;;  %2839 = vmatpush1.bf16.msra.mxu1 %v4226_v36  ;;  %v4417_v35 = vcombine.high %v571_v29, %v583_v30  ;;  %v4419_v36 = vcombine.high %v572_v31, %v584_v32  ;;  %v406_v29 = vld [vmem:[#allocation8 + $0x268] sm:$0xff]  ;;  %v4278_v32 = vcombine.low %v430_v20, %v442_v21 }
 0x128   :  { %2785 = vmatprep.subr.bf16.mxu0 %v4201_v37  ;;  %2840 = vmatprep.subr.bf16.mxu1 %v4203_v39  ;;  %v547_v37 = vld [vmem:[#allocation8 + $0x6d0] sm:$0xff]  ;;  %v418_v30 = vld [vmem:[#allocation8 + $0x2c8] sm:$0xff] }
 0x129   :  { %v559_v39 = vld [vmem:[#allocation8 + $0x730] sm:$0xff] }
 0x12a   :  { %v4392_v51 = vcombine.low %v547_v37, %v559_v39 }
 0x12b   :  { %2786 = vmatpush1.bf16.msra.mxu0 %v4200_v45  ;;  %2841 = vmatpush1.bf16.msra.mxu1 %v4202_v46  ;;  %v4393_v45 = vcombine.high %v547_v37, %v559_v39  ;;  %v4395_v46 = vcombine.high %v548_v40, %v560_v42  ;;  %v382_v37 = vld [vmem:[#allocation8 + $0x1a8] sm:$0xff]  ;;  %v4254_v42 = vcombine.low %v406_v29, %v418_v30 }
 0x12c   :  { %2787 = vmatprep.subr.bf16.mxu0 %v4177_v47  ;;  %2842 = vmatprep.subr.bf16.mxu1 %v4179_v48  ;;  %v523_v47 = vld [vmem:[#allocation8 + $0x610] sm:$0xff]  ;;  %v394_v39 = vld [vmem:[#allocation8 + $0x208] sm:$0xff] }
 0x12d   :  { %v535_v48 = vld [vmem:[#allocation8 + $0x670] sm:$0xff] }
 0x12e   :  { %v4368_v60 = vcombine.low %v523_v47, %v535_v48 }
 0x12f   :  { %2788 = vmatpush1.bf16.msra.mxu0 %v4176_v53  ;;  %2843 = vmatpush1.bf16.msra.mxu1 %v4178_v55  ;;  %v4369_v53 = vcombine.high %v523_v47, %v535_v48  ;;  %v4371_v55 = vcombine.high %v524_v49, %v536_v50  ;;  %v358_v47 = vld [vmem:[#allocation8 + $0xe8] sm:$0xff]  ;;  %v4230_v50 = vcombine.low %v382_v37, %v394_v39 }
 0x130   :  { %2789 = vmatprep.subr.bf16.mxu0 %v4537_v56  ;;  %2844 = vmatprep.subr.bf16.mxu1 %v4539_v57  ;;  %v501_v56 = vld [vmem:[#allocation8 + $0x560] sm:$0xff]  ;;  %v370_v48 = vld [vmem:[#allocation8 + $0x148] sm:$0xff] }
 0x131   :  { %v513_v57 = vld [vmem:[#allocation8 + $0x5c0] sm:$0xff] }
 0x132   :  { %v4348_v5 = vcombine.low %v501_v56, %v513_v57 }
 0x133   :  { %2790 = vmatpush2.bf16.msra.mxu0 %v4536_v62  ;;  %2845 = vmatpush2.bf16.msra.mxu1 %v4538_v63  ;;  %v4349_v62 = vcombine.high %v501_v56, %v513_v57  ;;  %v4351_v63 = vcombine.high %v502_v58, %v514_v59  ;;  %v334_v56 = vld [vmem:[#allocation8 + $0x28] sm:$0xff]  ;;  %v4206_v59 = vcombine.low %v358_v47, %v370_v48 }
 0x134   :  { %2791 = vmatprep.subr.bf16.mxu0 %v4513_v0  ;;  %2846 = vmatprep.subr.bf16.mxu1 %v4515_v1  ;;  %v477_v0 = vld [vmem:[#allocation8 + $0x4a0] sm:$0xff]  ;;  %v346_v57 = vld [vmem:[#allocation8 + $0x88] sm:$0xff] }
 0x135   :  { %v489_v1 = vld [vmem:[#allocation8 + $0x500] sm:$0xff] }
 0x136   :  { %v4324_v14 = vcombine.low %v477_v0, %v489_v1 }
 0x137   :  { %2792 = vmatpush2.bf16.msra.mxu0 %v4512_v7  ;;  %2847 = vmatpush2.bf16.msra.mxu1 %v4514_v8  ;;  %v4325_v7 = vcombine.high %v477_v0, %v489_v1  ;;  %v4327_v8 = vcombine.high %v478_v2, %v490_v4  ;;  %v694_v0 = vld [vmem:[#allocation8 + $0xb68] sm:$0xff]  ;;  %v4182_v4 = vcombine.low %v334_v56, %v346_v57 }
 0x138   :  { %2793 = vmatprep.subr.bf16.mxu0 %v4489_v9  ;;  %2848 = vmatprep.subr.bf16.mxu1 %v4491_v10  ;;  %v453_v9 = vld [vmem:[#allocation8 + $0x3e0] sm:$0xff]  ;;  %v706_v1 = vld [vmem:[#allocation8 + $0xbc8] sm:$0xff] }
 0x139   :  { %v465_v10 = vld [vmem:[#allocation8 + $0x440] sm:$0xff] }
 0x13a   :  { %v4300_v22 = vcombine.low %v453_v9, %v465_v10 }
 0x13b   :  { %2794 = vmatpush2.bf16.msra.mxu0 %v4488_v16  ;;  %2849 = vmatpush2.bf16.msra.mxu1 %v4490_v17  ;;  %v4301_v16 = vcombine.high %v453_v9, %v465_v10  ;;  %v4303_v17 = vcombine.high %v454_v12, %v466_v13  ;;  %v670_v9 = vld [vmem:[#allocation8 + $0xaa8] sm:$0xff]  ;;  %v4542_v13 = vcombine.low %v694_v0, %v706_v1 }
 0x13c   :  { %2795 = vmatprep.subr.bf16.mxu0 %v4465_v18  ;;  %2850 = vmatprep.subr.bf16.mxu1 %v4467_v19  ;;  %v429_v18 = vld [vmem:[#allocation8 + $0x320] sm:$0xff]  ;;  %v682_v10 = vld [vmem:[#allocation8 + $0xb08] sm:$0xff] }
 0x13d   :  { %v441_v19 = vld [vmem:[#allocation8 + $0x380] sm:$0xff] }
 0x13e   :  { %v4276_v31 = vcombine.low %v429_v18, %v441_v19 }
 0x13f   :  { %2796 = vmatpush2.bf16.msra.mxu0 %v4464_v25  ;;  %2851 = vmatpush2.bf16.msra.mxu1 %v4466_v26  ;;  %v4277_v25 = vcombine.high %v429_v18, %v441_v19  ;;  %v4279_v26 = vcombine.high %v430_v20, %v442_v21  ;;  %v646_v18 = vld [vmem:[#allocation8 + $0x9e8] sm:$0xff]  ;;  %v4518_v21 = vcombine.low %v670_v9, %v682_v10 }
 0x140   :  { %2797 = vmatprep.subr.bf16.mxu0 %v4441_v27  ;;  %2852 = vmatprep.subr.bf16.mxu1 %v4443_v28  ;;  %v405_v27 = vld [vmem:[#allocation8 + $0x260] sm:$0xff]  ;;  %v658_v19 = vld [vmem:[#allocation8 + $0xa48] sm:$0xff] }
 0x141   :  { %v417_v28 = vld [vmem:[#allocation8 + $0x2c0] sm:$0xff] }
 0x142   :  { %v4252_v40 = vcombine.low %v405_v27, %v417_v28 }
 0x143   :  { %2798 = vmatpush2.bf16.msra.mxu0 %v4440_v33  ;;  %2853 = vmatpush2.bf16.msra.mxu1 %v4442_v34  ;;  %v4253_v33 = vcombine.high %v405_v27, %v417_v28  ;;  %v4255_v34 = vcombine.high %v406_v29, %v418_v30  ;;  %v622_v27 = vld [vmem:[#allocation8 + $0x928] sm:$0xff]  ;;  %v4494_v30 = vcombine.low %v646_v18, %v658_v19 }
 0x144   :  { %2799 = vmatprep.subr.bf16.mxu0 %v4417_v35  ;;  %2854 = vmatprep.subr.bf16.mxu1 %v4419_v36  ;;  %v381_v35 = vld [vmem:[#allocation8 + $0x1a0] sm:$0xff]  ;;  %v634_v28 = vld [vmem:[#allocation8 + $0x988] sm:$0xff] }
 0x145   :  { %v393_v36 = vld [vmem:[#allocation8 + $0x200] sm:$0xff] }
 0x146   :  { %v4228_v49 = vcombine.low %v381_v35, %v393_v36 }
 0x147   :  { %2800 = vmatpush2.bf16.msra.mxu0 %v4416_v43  ;;  %2855 = vmatpush2.bf16.msra.mxu1 %v4418_v44  ;;  %v4229_v43 = vcombine.high %v381_v35, %v393_v36  ;;  %v4231_v44 = vcombine.high %v382_v37, %v394_v39  ;;  %v598_v35 = vld [vmem:[#allocation8 + $0x868] sm:$0xff]  ;;  %v4470_v39 = vcombine.low %v622_v27, %v634_v28 }
 0x148   :  { %2801 = vmatprep.subr.bf16.mxu0 %v4393_v45  ;;  %2856 = vmatprep.subr.bf16.mxu1 %v4395_v46  ;;  %v357_v45 = vld [vmem:[#allocation8 + $0xe0] sm:$0xff]  ;;  %v610_v36 = vld [vmem:[#allocation8 + $0x8c8] sm:$0xff] }
 0x149   :  { %v369_v46 = vld [vmem:[#allocation8 + $0x140] sm:$0xff] }
 0x14a   :  { %v4204_v58 = vcombine.low %v357_v45, %v369_v46 }
 0x14b   :  { %2802 = vmatpush2.bf16.msra.mxu0 %v4392_v51  ;;  %2857 = vmatpush2.bf16.msra.mxu1 %v4394_v52  ;;  %v4205_v51 = vcombine.high %v357_v45, %v369_v46  ;;  %v4207_v52 = vcombine.high %v358_v47, %v370_v48  ;;  %v574_v45 = vld [vmem:[#allocation8 + $0x7a8] sm:$0xff]  ;;  %v4446_v48 = vcombine.low %v598_v35, %v610_v36 }
 0x14c   :  { %2803 = vmatprep.subr.bf16.mxu0 %v4369_v53  ;;  %2858 = vmatprep.subr.bf16.mxu1 %v4371_v55  ;;  %v333_v53 = vld [vmem:[#allocation8 + $0x20] sm:$0xff]  ;;  %v586_v46 = vld [vmem:[#allocation8 + $0x808] sm:$0xff] }
 0x14d   :  { %v345_v55 = vld [vmem:[#allocation8 + $0x80] sm:$0xff] }
 0x14e   :  { %v4180_v2 = vcombine.low %v333_v53, %v345_v55 }
 0x14f   :  { %2804 = vmatpush2.bf16.msra.mxu0 %v4368_v60  ;;  %2859 = vmatpush2.bf16.msra.mxu1 %v4370_v61  ;;  %v4181_v60 = vcombine.high %v333_v53, %v345_v55  ;;  %v4183_v61 = vcombine.high %v334_v56, %v346_v57  ;;  %v550_v53 = vld [vmem:[#allocation8 + $0x6e8] sm:$0xff]  ;;  %v4422_v57 = vcombine.low %v574_v45, %v586_v46 }
 0x150   :  { %2883 = vmatprep.subr.bf16.mxu0 %v4349_v62  ;;  %2938 = vmatprep.subr.bf16.mxu1 %v4351_v63  ;;  %v693_v62 = vld [vmem:[#allocation8 + $0xb60] sm:$0xff]  ;;  %v562_v55 = vld [vmem:[#allocation8 + $0x748] sm:$0xff] }
 0x151   :  { %v705_v63 = vld [vmem:[#allocation8 + $0xbc0] sm:$0xff] }
 0x152   :  { %2806 = vmatmul.mubr.bf16.vlgmr.msra.gmra.mxu0 %v4767_v41  ;;  %2861 = vmatmul.mubr.bf16.vlgmr.msra.gmra.mxu1 %v4767_v41  ;;  %v4540_v12 = vcombine.low %v693_v62, %v705_v63 }
 0x153   :  { %2813 = vmatprep.mubr.bf16.mxu0 %v4773_v54  ;;  %2868 = vmatprep.mubr.bf16.mxu1 %v4773_v54 }
 0x154   :  { %2884 = vmatpush1.bf16.msra.mxu0 %v4348_v5  ;;  %2939 = vmatpush1.bf16.msra.mxu1 %v4350_v6  ;;  %v4541_v5 = vcombine.high %v693_v62, %v705_v63  ;;  %v4543_v6 = vcombine.high %v694_v0, %v706_v1  ;;  %v526_v62 = vld [vmem:[#allocation8 + $0x628] sm:$0xff]  ;;  %v4398_v1 = vcombine.low %v550_v53, %v562_v55 }
 0x155   :  { %2885 = vmatprep.subr.bf16.mxu0 %v4325_v7  ;;  %2940 = vmatprep.subr.bf16.mxu1 %v4327_v8  ;;  %v669_v7 = vld [vmem:[#allocation8 + $0xaa0] sm:$0xff]  ;;  %v538_v63 = vld [vmem:[#allocation8 + $0x688] sm:$0xff] }
 0x156   :  { %v681_v8 = vld [vmem:[#allocation8 + $0xb00] sm:$0xff] }
 0x157   :  { %v4516_v20 = vcombine.low %v669_v7, %v681_v8 }
 0x158   :  { %2886 = vmatpush1.bf16.msra.mxu0 %v4324_v14  ;;  %2941 = vmatpush1.bf16.msra.mxu1 %v4326_v15  ;;  %v4517_v14 = vcombine.high %v669_v7, %v681_v8  ;;  %v4519_v15 = vcombine.high %v670_v9, %v682_v10  ;;  %v504_v7 = vld [vmem:[#allocation8 + $0x578] sm:$0xff]  ;;  %v4374_v10 = vcombine.low %v526_v62, %v538_v63 }
 0x159   :  { %2887 = vmatprep.subr.bf16.mxu0 %v4301_v16  ;;  %2942 = vmatprep.subr.bf16.mxu1 %v4303_v17  ;;  %v645_v16 = vld [vmem:[#allocation8 + $0x9e0] sm:$0xff]  ;;  %v516_v8 = vld [vmem:[#allocation8 + $0x5d8] sm:$0xff] }
 0x15a   :  { %2814 = vmatmul.mubr.bf16.gmra.mxu0 %v4777_v3  ;;  %2869 = vmatmul.mubr.bf16.gmra.mxu1 %v4777_v3  ;;  %v657_v17 = vld [vmem:[#allocation8 + $0xa40] sm:$0xff] }
 0x15b   :  { %2821 = vmatprep.mubr.bf16.mxu0 %v4779_v11  ;;  %2876 = vmatprep.mubr.bf16.mxu1 %v4779_v11  ;;  %v4492_v29 = vcombine.low %v645_v16, %v657_v17 }
 0x15c   :  { %2888 = vmatpush1.bf16.msra.mxu0 %v4300_v22  ;;  %2943 = vmatpush1.bf16.msra.mxu1 %v4302_v24  ;;  %v4493_v22 = vcombine.high %v645_v16, %v657_v17  ;;  %v4495_v24 = vcombine.high %v646_v18, %v658_v19  ;;  %v480_v16 = vld [vmem:[#allocation8 + $0x4b8] sm:$0xff]  ;;  %v4354_v19 = vcombine.low %v504_v7, %v516_v8 }
 0x15d   :  { %2889 = vmatprep.subr.bf16.mxu0 %v4277_v25  ;;  %2944 = vmatprep.subr.bf16.mxu1 %v4279_v26  ;;  %v621_v25 = vld [vmem:[#allocation8 + $0x920] sm:$0xff]  ;;  %v492_v17 = vld [vmem:[#allocation8 + $0x518] sm:$0xff] }
 0x15e   :  { %v633_v26 = vld [vmem:[#allocation8 + $0x980] sm:$0xff] }
 0x15f   :  { %v4468_v37 = vcombine.low %v621_v25, %v633_v26 }
 0x160   :  { %2890 = vmatpush1.bf16.msra.mxu0 %v4276_v31  ;;  %2945 = vmatpush1.bf16.msra.mxu1 %v4278_v32  ;;  %v4469_v31 = vcombine.high %v621_v25, %v633_v26  ;;  %v4471_v32 = vcombine.high %v622_v27, %v634_v28  ;;  %v456_v25 = vld [vmem:[#allocation8 + $0x3f8] sm:$0xff]  ;;  %v4330_v28 = vcombine.low %v480_v16, %v492_v17 }
 0x161   :  { %2891 = vmatprep.subr.bf16.mxu0 %v4253_v33  ;;  %2946 = vmatprep.subr.bf16.mxu1 %v4255_v34  ;;  %v597_v33 = vld [vmem:[#allocation8 + $0x860] sm:$0xff]  ;;  %v468_v26 = vld [vmem:[#allocation8 + $0x458] sm:$0xff] }
 0x162   :  { %2822 = vmatmul.mubr.bf16.gmra.mxu0 %v4786_v23  ;;  %2877 = vmatmul.mubr.bf16.gmra.mxu1 %v4786_v23  ;;  %v609_v34 = vld [vmem:[#allocation8 + $0x8c0] sm:$0xff] }
 0x163   :  { %2915 = vmatprep.mubr.bf16.mxu0 %v4763_v38  ;;  %2970 = vmatprep.mubr.bf16.mxu1 %v4763_v38  ;;  %v4444_v47 = vcombine.low %v597_v33, %v609_v34 }
 0x164   :  { %2892 = vmatpush1.bf16.msra.mxu0 %v4252_v40  ;;  %2947 = vmatpush1.bf16.msra.mxu1 %v4254_v42  ;;  %v4445_v40 = vcombine.high %v597_v33, %v609_v34  ;;  %v4447_v42 = vcombine.high %v598_v35, %v610_v36  ;;  %v432_v33 = vld [vmem:[#allocation8 + $0x338] sm:$0xff]  ;;  %v4306_v36 = vcombine.low %v456_v25, %v468_v26 }
 0x165   :  { %2893 = vmatprep.subr.bf16.mxu0 %v4229_v43  ;;  %2948 = vmatprep.subr.bf16.mxu1 %v4231_v44  ;;  %v573_v43 = vld [vmem:[#allocation8 + $0x7a0] sm:$0xff]  ;;  %v444_v34 = vld [vmem:[#allocation8 + $0x398] sm:$0xff] }
 0x166   :  { %v585_v44 = vld [vmem:[#allocation8 + $0x800] sm:$0xff] }
 0x167   :  { %v4420_v56 = vcombine.low %v573_v43, %v585_v44 }
 0x168   :  { %2894 = vmatpush1.bf16.msra.mxu0 %v4228_v49  ;;  %2949 = vmatpush1.bf16.msra.mxu1 %v4230_v50  ;;  %v4421_v49 = vcombine.high %v573_v43, %v585_v44  ;;  %v4423_v50 = vcombine.high %v574_v45, %v586_v46  ;;  %v408_v43 = vld [vmem:[#allocation8 + $0x278] sm:$0xff]  ;;  %v4282_v46 = vcombine.low %v432_v33, %v444_v34 }
 0x169   :  { %2895 = vmatprep.subr.bf16.mxu0 %v4205_v51  ;;  %2950 = vmatprep.subr.bf16.mxu1 %v4207_v52  ;;  %v549_v51 = vld [vmem:[#allocation8 + $0x6e0] sm:$0xff]  ;;  %v420_v44 = vld [vmem:[#allocation8 + $0x2d8] sm:$0xff] }
 0x16a   :  { %v561_v52 = vld [vmem:[#allocation8 + $0x740] sm:$0xff] }
 0x16b   :  { %v4396_v0 = vcombine.low %v549_v51, %v561_v52 }
 0x16c   :  { %2896 = vmatpush1.bf16.msra.mxu0 %v4204_v58  ;;  %2951 = vmatpush1.bf16.msra.mxu1 %v4206_v59  ;;  %v4397_v58 = vcombine.high %v549_v51, %v561_v52  ;;  %v4399_v59 = vcombine.high %v550_v53, %v562_v55  ;;  %v384_v51 = vld [vmem:[#allocation8 + $0x1b8] sm:$0xff]  ;;  %v4258_v55 = vcombine.low %v408_v43, %v420_v44 }
 0x16d   :  { %2897 = vmatprep.subr.bf16.mxu0 %v4181_v60  ;;  %2952 = vmatprep.subr.bf16.mxu1 %v4183_v61  ;;  %v525_v60 = vld [vmem:[#allocation8 + $0x620] sm:$0xff]  ;;  %v396_v52 = vld [vmem:[#allocation8 + $0x218] sm:$0xff] }
 0x16e   :  { %v537_v61 = vld [vmem:[#allocation8 + $0x680] sm:$0xff] }
 0x16f   :  { %v4372_v9 = vcombine.low %v525_v60, %v537_v61 }
 0x170   :  { %2898 = vmatpush1.bf16.msra.mxu0 %v4180_v2  ;;  %2953 = vmatpush1.bf16.msra.mxu1 %v4182_v4  ;;  %v4373_v2 = vcombine.high %v525_v60, %v537_v61  ;;  %v4375_v4 = vcombine.high %v526_v62, %v538_v63  ;;  %v360_v60 = vld [vmem:[#allocation8 + $0xf8] sm:$0xff]  ;;  %v4234_v63 = vcombine.low %v384_v51, %v396_v52 }
 0x171   :  { %2899 = vmatprep.subr.bf16.mxu0 %v4541_v5  ;;  %2954 = vmatprep.subr.bf16.mxu1 %v4543_v6  ;;  %v503_v5 = vld [vmem:[#allocation8 + $0x570] sm:$0xff]  ;;  %v372_v61 = vld [vmem:[#allocation8 + $0x158] sm:$0xff] }
 0x172   :  { %v515_v6 = vld [vmem:[#allocation8 + $0x5d0] sm:$0xff] }
 0x173   :  { %v4352_v18 = vcombine.low %v503_v5, %v515_v6 }
 0x174   :  { %2900 = vmatpush2.bf16.msra.mxu0 %v4540_v12  ;;  %2955 = vmatpush2.bf16.msra.mxu1 %v4542_v13  ;;  %v4353_v12 = vcombine.high %v503_v5, %v515_v6  ;;  %v4355_v13 = vcombine.high %v504_v7, %v516_v8  ;;  %v336_v5 = vld [vmem:[#allocation8 + $0x38] sm:$0xff]  ;;  %v4210_v8 = vcombine.low %v360_v60, %v372_v61 }
 0x175   :  { %2901 = vmatprep.subr.bf16.mxu0 %v4517_v14  ;;  %2956 = vmatprep.subr.bf16.mxu1 %v4519_v15  ;;  %v479_v14 = vld [vmem:[#allocation8 + $0x4b0] sm:$0xff]  ;;  %v348_v6 = vld [vmem:[#allocation8 + $0x98] sm:$0xff] }
 0x176   :  { %v491_v15 = vld [vmem:[#allocation8 + $0x510] sm:$0xff] }
 0x177   :  { %v4328_v27 = vcombine.low %v479_v14, %v491_v15 }
 0x178   :  { %2902 = vmatpush2.bf16.msra.mxu0 %v4516_v20  ;;  %2957 = vmatpush2.bf16.msra.mxu1 %v4518_v21  ;;  %v4329_v20 = vcombine.high %v479_v14, %v491_v15  ;;  %v4331_v21 = vcombine.high %v480_v16, %v492_v17  ;;  %v696_v14 = vld [vmem:[#allocation8 + $0xb78] sm:$0xff]  ;;  %v4186_v17 = vcombine.low %v336_v5, %v348_v6 }
 0x179   :  { %2903 = vmatprep.subr.bf16.mxu0 %v4493_v22  ;;  %2958 = vmatprep.subr.bf16.mxu1 %v4495_v24  ;;  %v455_v22 = vld [vmem:[#allocation8 + $0x3f0] sm:$0xff]  ;;  %v708_v15 = vld [vmem:[#allocation8 + $0xbd8] sm:$0xff] }
 0x17a   :  { %v467_v24 = vld [vmem:[#allocation8 + $0x450] sm:$0xff] }
 0x17b   :  { %v4304_v35 = vcombine.low %v455_v22, %v467_v24 }
 0x17c   :  { %2904 = vmatpush2.bf16.msra.mxu0 %v4492_v29  ;;  %2959 = vmatpush2.bf16.msra.mxu1 %v4494_v30  ;;  %v4305_v29 = vcombine.high %v455_v22, %v467_v24  ;;  %v4307_v30 = vcombine.high %v456_v25, %v468_v26  ;;  %v672_v22 = vld [vmem:[#allocation8 + $0xab8] sm:$0xff]  ;;  %v4546_v26 = vcombine.low %v696_v14, %v708_v15 }
 0x17d   :  { %2905 = vmatprep.subr.bf16.mxu0 %v4469_v31  ;;  %2960 = vmatprep.subr.bf16.mxu1 %v4471_v32  ;;  %v431_v31 = vld [vmem:[#allocation8 + $0x330] sm:$0xff]  ;;  %v684_v24 = vld [vmem:[#allocation8 + $0xb18] sm:$0xff] }
 0x17e   :  { %v443_v32 = vld [vmem:[#allocation8 + $0x390] sm:$0xff] }
 0x17f   :  { %v4280_v45 = vcombine.low %v431_v31, %v443_v32 }
 0x180   :  { %2906 = vmatpush2.bf16.msra.mxu0 %v4468_v37  ;;  %2961 = vmatpush2.bf16.msra.mxu1 %v4470_v39  ;;  %v4281_v37 = vcombine.high %v431_v31, %v443_v32  ;;  %v4283_v39 = vcombine.high %v432_v33, %v444_v34  ;;  %v648_v31 = vld [vmem:[#allocation8 + $0x9f8] sm:$0xff]  ;;  %v4522_v34 = vcombine.low %v672_v22, %v684_v24 }
 0x181   :  { %2907 = vmatprep.subr.bf16.mxu0 %v4445_v40  ;;  %2962 = vmatprep.subr.bf16.mxu1 %v4447_v42  ;;  %v407_v40 = vld [vmem:[#allocation8 + $0x270] sm:$0xff]  ;;  %v660_v32 = vld [vmem:[#allocation8 + $0xa58] sm:$0xff] }
 0x182   :  { %v419_v42 = vld [vmem:[#allocation8 + $0x2d0] sm:$0xff] }
 0x183   :  { %v4256_v53 = vcombine.low %v407_v40, %v419_v42 }
 0x184   :  { %2908 = vmatpush2.bf16.msra.mxu0 %v4444_v47  ;;  %2963 = vmatpush2.bf16.msra.mxu1 %v4446_v48  ;;  %v4257_v47 = vcombine.high %v407_v40, %v419_v42  ;;  %v4259_v48 = vcombine.high %v408_v43, %v420_v44  ;;  %v624_v40 = vld [vmem:[#allocation8 + $0x938] sm:$0xff]  ;;  %v4498_v44 = vcombine.low %v648_v31, %v660_v32 }
 0x185   :  { %2909 = vmatprep.subr.bf16.mxu0 %v4421_v49  ;;  %2964 = vmatprep.subr.bf16.mxu1 %v4423_v50  ;;  %v383_v49 = vld [vmem:[#allocation8 + $0x1b0] sm:$0xff]  ;;  %v636_v42 = vld [vmem:[#allocation8 + $0x998] sm:$0xff] }
 0x186   :  { %v395_v50 = vld [vmem:[#allocation8 + $0x210] sm:$0xff] }
 0x187   :  { %v4232_v62 = vcombine.low %v383_v49, %v395_v50 }
 0x188   :  { %2910 = vmatpush2.bf16.msra.mxu0 %v4420_v56  ;;  %2965 = vmatpush2.bf16.msra.mxu1 %v4422_v57  ;;  %v4233_v56 = vcombine.high %v383_v49, %v395_v50  ;;  %v4235_v57 = vcombine.high %v384_v51, %v396_v52  ;;  %v600_v49 = vld [vmem:[#allocation8 + $0x878] sm:$0xff]  ;;  %v4474_v52 = vcombine.low %v624_v40, %v636_v42 }
 0x189   :  { %2911 = vmatprep.subr.bf16.mxu0 %v4397_v58  ;;  %2966 = vmatprep.subr.bf16.mxu1 %v4399_v59  ;;  %v359_v58 = vld [vmem:[#allocation8 + $0xf0] sm:$0xff]  ;;  %v612_v50 = vld [vmem:[#allocation8 + $0x8d8] sm:$0xff] }
 0x18a   :  { %v371_v59 = vld [vmem:[#allocation8 + $0x150] sm:$0xff] }
 0x18b   :  { %v4208_v7 = vcombine.low %v359_v58, %v371_v59 }
 0x18c   :  { %2912 = vmatpush2.bf16.msra.mxu0 %v4396_v0  ;;  %2967 = vmatpush2.bf16.msra.mxu1 %v4398_v1  ;;  %v4209_v0 = vcombine.high %v359_v58, %v371_v59  ;;  %v4211_v1 = vcombine.high %v360_v60, %v372_v61  ;;  %v576_v58 = vld [vmem:[#allocation8 + $0x7b8] sm:$0xff]  ;;  %v4450_v61 = vcombine.low %v600_v49, %v612_v50 }
 0x18d   :  { %2913 = vmatprep.subr.bf16.mxu0 %v4373_v2  ;;  %2968 = vmatprep.subr.bf16.mxu1 %v4375_v4  ;;  %v335_v2 = vld [vmem:[#allocation8 + $0x30] sm:$0xff]  ;;  %v588_v59 = vld [vmem:[#allocation8 + $0x818] sm:$0xff] }
 0x18e   :  { %v347_v4 = vld [vmem:[#allocation8 + $0x90] sm:$0xff] }
 0x18f   :  { %v4184_v16 = vcombine.low %v335_v2, %v347_v4 }
 0x190   :  { %2914 = vmatpush2.bf16.msra.mxu0 %v4372_v9  ;;  %2969 = vmatpush2.bf16.msra.mxu1 %v4374_v10  ;;  %v4185_v9 = vcombine.high %v335_v2, %v347_v4  ;;  %v4187_v10 = vcombine.high %v336_v5, %v348_v6  ;;  %v552_v2 = vld [vmem:[#allocation8 + $0x6f8] sm:$0xff]  ;;  %v4426_v6 = vcombine.low %v576_v58, %v588_v59 }
 0x191   :  { %2993 = vmatprep.subr.bf16.mxu0 %v4353_v12  ;;  %3048 = vmatprep.subr.bf16.mxu1 %v4355_v13  ;;  %v695_v12 = vld [vmem:[#allocation8 + $0xb70] sm:$0xff]  ;;  %v564_v4 = vld [vmem:[#allocation8 + $0x758] sm:$0xff] }
 0x192   :  { %v707_v13 = vld [vmem:[#allocation8 + $0xbd0] sm:$0xff] }
 0x193   :  { %2916 = vmatmul.mubr.bf16.vlgmr.msra.gmra.mxu0 %v4767_v41  ;;  %2971 = vmatmul.mubr.bf16.vlgmr.msra.gmra.mxu1 %v4767_v41  ;;  %v4544_v25 = vcombine.low %v695_v12, %v707_v13 }
 0x194   :  { %2923 = vmatprep.mubr.bf16.mxu0 %v4773_v54  ;;  %2978 = vmatprep.mubr.bf16.mxu1 %v4773_v54 }
 0x195   :  { %2994 = vmatpush1.bf16.msra.mxu0 %v4352_v18  ;;  %3049 = vmatpush1.bf16.msra.mxu1 %v4354_v19  ;;  %v4545_v18 = vcombine.high %v695_v12, %v707_v13  ;;  %v4547_v19 = vcombine.high %v696_v14, %v708_v15  ;;  %v528_v12 = vld [vmem:[#allocation8 + $0x638] sm:$0xff]  ;;  %v4720_v14 = vmov 1966171168  }
 0x196   :  { %2995 = vmatprep.subr.bf16.mxu0 %v4329_v20  ;;  %3050 = vmatprep.subr.bf16.mxu1 %v4331_v21  ;;  %v671_v20 = vld [vmem:[#allocation8 + $0xab0] sm:$0xff]  ;;  %v540_v13 = vld [vmem:[#allocation8 + $0x698] sm:$0xff]  ;;  %v3327_v15 = vunpack.c.l.s4 %v4720_v14 }
 0x197   :  { %v683_v21 = vld [vmem:[#allocation8 + $0xb10] sm:$0xff] }
 0x198   :  { %v4520_v33 = vcombine.low %v671_v20, %v683_v21 }
 0x199   :  { %2996 = vmatpush1.bf16.msra.mxu0 %v4328_v27  ;;  %3051 = vmatpush1.bf16.msra.mxu1 %v4330_v28  ;;  %v4521_v27 = vcombine.high %v671_v20, %v683_v21  ;;  %v4523_v28 = vcombine.high %v672_v22, %v684_v24  ;;  %v4379_v20 = vcombine.high %v528_v12, %v540_v13  ;;  %v505_v21 = vld [vmem:[#allocation8 + $0x580] sm:$0xff]  ;;  %v506_v24 = vld [vmem:[#allocation8 + $0x588] sm:$0xff] }
 0x19a   :  { %2997 = vmatprep.subr.bf16.mxu0 %v4305_v29  ;;  %3052 = vmatprep.subr.bf16.mxu1 %v4307_v30  ;;  %v647_v29 = vld [vmem:[#allocation8 + $0x9f0] sm:$0xff]  ;;  %v517_v22 = vld [vmem:[#allocation8 + $0x5e0] sm:$0xff] }
 0x19b   :  { %2924 = vmatmul.mubr.bf16.gmra.mxu0 %v4777_v3  ;;  %2979 = vmatmul.mubr.bf16.gmra.mxu1 %v4777_v3  ;;  %v659_v30 = vld [vmem:[#allocation8 + $0xa50] sm:$0xff] }
 0x19c   :  { %2929 = vmatprep.mubr.bf16.mxu0 %v4779_v11  ;;  %2984 = vmatprep.mubr.bf16.mxu1 %v4779_v11  ;;  %v4496_v43 = vcombine.low %v647_v29, %v659_v30 }
 0x19d   :  { %2998 = vmatpush1.bf16.msra.mxu0 %v4304_v35  ;;  %3053 = vmatpush1.bf16.msra.mxu1 %v4306_v36  ;;  %v4497_v35 = vcombine.high %v647_v29, %v659_v30  ;;  %v4499_v36 = vcombine.high %v648_v31, %v660_v32  ;;  %v4378_v29 = vcombine.low %v528_v12, %v540_v13 }
 0x19e   :  { %2999 = vmatprep.subr.bf16.mxu0 %v4281_v37  ;;  %3054 = vmatprep.subr.bf16.mxu1 %v4283_v39  ;;  %v623_v37 = vld [vmem:[#allocation8 + $0x930] sm:$0xff]  ;;  %v4357_v30 = vcombine.high %v505_v21, %v517_v22 }
 0x19f   :  { %v635_v39 = vld [vmem:[#allocation8 + $0x990] sm:$0xff] }
 0x1a0   :  { %v4472_v51 = vcombine.low %v623_v37, %v635_v39 }
 0x1a1   :  { %3000 = vmatpush1.bf16.msra.mxu0 %v4280_v45  ;;  %3055 = vmatpush1.bf16.msra.mxu1 %v4282_v46  ;;  %v4473_v45 = vcombine.high %v623_v37, %v635_v39  ;;  %v4475_v46 = vcombine.high %v624_v40, %v636_v42  ;;  %v4356_v37 = vcombine.low %v505_v21, %v517_v22  ;;  %v421_v21 = vld [vmem:[#allocation8 + $0x2e0] sm:$0xff]  ;;  %v410_v22 = vld [vmem:[#allocation8 + $0x288] sm:$0xff] }
 0x1a2   :  { %3001 = vmatprep.subr.bf16.mxu0 %v4257_v47  ;;  %3056 = vmatprep.subr.bf16.mxu1 %v4259_v48  ;;  %v599_v47 = vld [vmem:[#allocation8 + $0x870] sm:$0xff] }
 0x1a3   :  { %2930 = vmatmul.mubr.bf16.gmra.mxu0 %v4786_v23  ;;  %2985 = vmatmul.mubr.bf16.gmra.mxu1 %v4786_v23  ;;  %v611_v48 = vld [vmem:[#allocation8 + $0x8d0] sm:$0xff] }
 0x1a4   :  { %3025 = vmatprep.mubr.bf16.mxu0 %v4763_v38  ;;  %3080 = vmatprep.mubr.bf16.mxu1 %v4763_v38  ;;  %v4448_v60 = vcombine.low %v599_v47, %v611_v48 }
 0x1a5   :  { %3002 = vmatpush1.bf16.msra.mxu0 %v4256_v53  ;;  %3057 = vmatpush1.bf16.msra.mxu1 %v4258_v55  ;;  %v4449_v53 = vcombine.high %v599_v47, %v611_v48  ;;  %v4451_v55 = vcombine.high %v600_v49, %v612_v50  ;;  %v469_v47 = vld [vmem:[#allocation8 + $0x460] sm:$0xff]  ;;  %v458_v48 = vld [vmem:[#allocation8 + $0x408] sm:$0xff] }
 0x1a6   :  { %3003 = vmatprep.subr.bf16.mxu0 %v4233_v56  ;;  %3058 = vmatprep.subr.bf16.mxu1 %v4235_v57  ;;  %v575_v56 = vld [vmem:[#allocation8 + $0x7b0] sm:$0xff]  ;;  %v470_v49 = vld [vmem:[#allocation8 + $0x468] sm:$0xff] }
 0x1a7   :  { %v587_v57 = vld [vmem:[#allocation8 + $0x810] sm:$0xff]  ;;  %v4310_v13 = vcombine.low %v458_v48, %v470_v49 }
 0x1a8   :  { %v4424_v5 = vcombine.low %v575_v56, %v587_v57 }
 0x1a9   :  { %3004 = vmatpush1.bf16.msra.mxu0 %v4232_v62  ;;  %3059 = vmatpush1.bf16.msra.mxu1 %v4234_v63  ;;  %v4425_v62 = vcombine.high %v575_v56, %v587_v57  ;;  %v4427_v63 = vcombine.high %v576_v58, %v588_v59  ;;  %v4828_v56 = vld [vmem:[#allocation9] sm:$0x1] }
 0x1aa   :  { %3005 = vmatprep.subr.bf16.mxu0 %v4209_v0  ;;  %3060 = vmatprep.subr.bf16.mxu1 %v4211_v1  ;;  %v551_v0 = vld [vmem:[#allocation8 + $0x6f0] sm:$0xff] }
 0x1ab   :  { %v563_v1 = vld [vmem:[#allocation8 + $0x750] sm:$0xff] }
 0x1ad   :  { %3006 = vmatpush1.bf16.msra.mxu0 %v4208_v7  ;;  %3061 = vmatpush1.bf16.msra.mxu1 %v4210_v8  ;;  %v4401_v7 = vcombine.high %v551_v0, %v563_v1  ;;  %v4403_v8 = vcombine.high %v552_v2, %v564_v4 }
 0x1ae   :  { %3007 = vmatprep.subr.bf16.mxu0 %v4185_v9  ;;  %3062 = vmatprep.subr.bf16.mxu1 %v4187_v10  ;;  %v527_v9 = vld [vmem:[#allocation8 + $0x630] sm:$0xff] }
 0x1af   :  { %v539_v10 = vld [vmem:[#allocation8 + $0x690] sm:$0xff] }
 0x1b1   :  { %3008 = vmatpush1.bf16.msra.mxu0 %v4184_v16  ;;  %3063 = vmatpush1.bf16.msra.mxu1 %v4186_v17  ;;  %v3329_v16 = vlaneseq  ;;  %v4400_v17 = vcombine.low %v551_v0, %v563_v1  ;;  %v433_v1 = vld [vmem:[#allocation8 + $0x340] sm:$0xff] }
 0x1b2   :  { %3009 = vmatprep.subr.bf16.mxu0 %v4545_v18  ;;  %3064 = vmatprep.subr.bf16.mxu1 %v4547_v19  ;;  %v4402_v18 = vcombine.low %v552_v2, %v564_v4  ;;  %v4377_v19 = vcombine.high %v527_v9, %v539_v10  ;;  %v445_v2 = vld [vmem:[#allocation8 + $0x3a0] sm:$0xff] }
 0x1b3   :  { %v4285_v14 = vcombine.high %v433_v1, %v445_v2 }
 0x1b5   :  { %3010 = vmatpush2.bf16.msra.mxu0 %v4544_v25  ;;  %3065 = vmatpush2.bf16.msra.mxu1 %v4546_v26  ;;  %v518_v25 = vld [vmem:[#allocation8 + $0x5e8] sm:$0xff]  ;;  %v3328_v26 = vunpack.c.0.s8 %v3327_v15 }
 0x1b6   :  { %3011 = vmatprep.subr.bf16.mxu0 %v4521_v27  ;;  %3066 = vmatprep.subr.bf16.mxu1 %v4523_v28  ;;  %v4816_v27 = vshrl.u32 %v3329_v16, 7  ;;  %v4376_v28 = vcombine.low %v527_v9, %v539_v10  ;;  %v4359_v31 = vcombine.high %v506_v24, %v518_v25  ;;  %v4358_v39 = vcombine.low %v506_v24, %v518_v25  ;;  %v422_v24 = vld [vmem:[#allocation8 + $0x2e8] sm:$0xff] }
 0x1b8   :  { %v4819_v32 = vsub.s32 %v3328_v26, %v4816_v27 }
 0x1b9   :  { %3012 = vmatpush2.bf16.msra.mxu0 %v4520_v33  ;;  %3067 = vmatpush2.bf16.msra.mxu1 %v4522_v34  ;;  %v481_v33 = vld [vmem:[#allocation8 + $0x4c0] sm:$0xff] }
 0x1ba   :  { %3013 = vmatprep.subr.bf16.mxu0 %v4497_v35  ;;  %3068 = vmatprep.subr.bf16.mxu1 %v4499_v36  ;;  %v493_v34 = vld [vmem:[#allocation8 + $0x520] sm:$0xff]  ;;  %v482_v35 = vld [vmem:[#allocation8 + $0x4c8] sm:$0xff] }
 0x1bb   :  { %v494_v36 = vld [vmem:[#allocation8 + $0x528] sm:$0xff] }
 0x1bc   :  { %v4334_v57 = vcombine.low %v482_v35, %v494_v36 }
 0x1bd   :  { %3014 = vmatpush2.bf16.msra.mxu0 %v4496_v43  ;;  %3069 = vmatpush2.bf16.msra.mxu1 %v4498_v44  ;;  %v457_v43 = vld [vmem:[#allocation8 + $0x400] sm:$0xff] }
 0x1be   :  { %3015 = vmatprep.subr.bf16.mxu0 %v4473_v45  ;;  %3070 = vmatprep.subr.bf16.mxu1 %v4475_v46  ;;  %v4333_v45 = vcombine.high %v481_v33, %v493_v34  ;;  %v4335_v46 = vcombine.high %v482_v35, %v494_v36  ;;  %v4308_v12 = vcombine.low %v457_v43, %v469_v47 }
 0x1c1   :  { %3016 = vmatpush2.bf16.msra.mxu0 %v4472_v51  ;;  %3071 = vmatpush2.bf16.msra.mxu1 %v4474_v52 }
 0x1c2   :  { %3017 = vmatprep.subr.bf16.mxu0 %v4449_v53  ;;  %3072 = vmatprep.subr.bf16.mxu1 %v4451_v55  ;;  %v4332_v55 = vcombine.low %v481_v33, %v493_v34  ;;  %v385_v34 = vld [vmem:[#allocation8 + $0x1c0] sm:$0xff] }
 0x1c5   :  { %3018 = vmatpush2.bf16.msra.mxu0 %v4448_v60  ;;  %3073 = vmatpush2.bf16.msra.mxu1 %v4450_v61  ;;  %v4309_v60 = vcombine.high %v457_v43, %v469_v47  ;;  %v4311_v61 = vcombine.high %v458_v48, %v470_v49  ;;  %v398_v43 = vld [vmem:[#allocation8 + $0x228] sm:$0xff] }
 0x1c6   :  { %3019 = vmatprep.subr.bf16.mxu0 %v4425_v62  ;;  %3074 = vmatprep.subr.bf16.mxu1 %v4427_v63 }
 0x1c9   :  { %3020 = vmatpush2.bf16.msra.mxu0 %v4424_v5  ;;  %3075 = vmatpush2.bf16.msra.mxu1 %v4426_v6  ;;  %v434_v6 = vld [vmem:[#allocation8 + $0x348] sm:$0xff] }
 0x1ca   :  { %3021 = vmatprep.subr.bf16.mxu0 %v4401_v7  ;;  %3076 = vmatprep.subr.bf16.mxu1 %v4403_v8  ;;  %v446_v7 = vld [vmem:[#allocation8 + $0x3a8] sm:$0xff] }
 0x1cd   :  { %3022 = vmatpush2.bf16.msra.mxu0 %v4400_v17  ;;  %3077 = vmatpush2.bf16.msra.mxu1 %v4402_v18 }
 0x1ce   :  { %3023 = vmatprep.subr.bf16.mxu0 %v4377_v19  ;;  %3078 = vmatprep.subr.bf16.mxu1 %v4379_v20  ;;  %v4287_v19 = vcombine.high %v434_v6, %v446_v7  ;;  %v409_v20 = vld [vmem:[#allocation8 + $0x280] sm:$0xff] }
 0x1cf   :  { %v4261_v33 = vcombine.high %v409_v20, %v421_v21  ;;  %v4260_v47 = vcombine.low %v409_v20, %v421_v21 }
 0x1d1   :  { %3024 = vmatpush2.bf16.msra.mxu0 %v4376_v28  ;;  %3079 = vmatpush2.bf16.msra.mxu1 %v4378_v29 }
 0x1d2   :  { %3103 = vmatprep.subr.bf16.mxu0 %v4357_v30  ;;  %3158 = vmatprep.subr.bf16.mxu1 %v4359_v31  ;;  %v2697_v40 = vpop.f32.mrf.mxu0  ;;  %v2752_v42 = vpop.f32.mrf.mxu1  ;;  %v4284_v30 = vcombine.low %v433_v1, %v445_v2  ;;  %v4286_v31 = vcombine.low %v434_v6, %v446_v7 }
 0x1d3   :  { %v3350_v44 = vrot.slane %v2752_v42, %v4819_v32  ;;  %v3324_v8 = vadd.f32 %v4828_v56, %v2697_v40  ;;  %v397_v40 = vld [vmem:[#allocation8 + $0x220] sm:$0xff]  ;;  %v386_v42 = vld [vmem:[#allocation8 + $0x1c8] sm:$0xff] }
 0x1d4   :  { %3026 = vmatmul.mubr.bf16.vlgmr.msra.gmra.mxu0 %v4767_v41  ;;  %3081 = vmatmul.mubr.bf16.vlgmr.msra.gmra.mxu1 %v4767_v41  ;;  %v2699_v50 = vpop.f32.mrf.mxu0  ;;  %v2754_v51 = vpop.f32.mrf.mxu1  ;;  %v4238_v7 = vcombine.low %v386_v42, %v398_v43 }
 0x1d5   :  { %3033 = vmatprep.mubr.bf16.mxu0 %v4773_v54  ;;  %3088 = vmatprep.mubr.bf16.mxu1 %v4773_v54  ;;  %v3332_v52 = vrot.slane %v2699_v50, %v4819_v32  ;;  %v3368_v53 = vrot.slane %v2754_v51, %v4819_v32  ;;  %v3357_v62 = vrot.slane %v3350_v44, %v4819_v32 }
 0x1d6   :  { %3104 = vmatpush1.bf16.msra.mxu0 %v4356_v37  ;;  %3159 = vmatpush1.bf16.msra.mxu1 %v4358_v39  ;;  %v2701_v58 = vpop.f32.mrf.mxu0  ;;  %v2756_v59 = vpop.f32.mrf.mxu1  ;;  %v4263_v39 = vcombine.high %v410_v22, %v422_v24  ;;  %v4262_v51 = vcombine.low %v410_v22, %v422_v24 }
 0x1d7   :  { %v3333_v63 = vcombine.high %v3332_v52, %v3332_v52  ;;  %v3369_v0 = vcombine.high %v3368_v53, %v3368_v53  ;;  %3105 = vmatprep.subr.bf16.mxu0 %v4333_v45  ;;  %3160 = vmatprep.subr.bf16.mxu1 %v4335_v46  ;;  %v3358_v17 = vcombine.high %v3357_v62, %v3357_v62  ;;  %v361_v58 = vld [vmem:[#allocation8 + $0x100] sm:$0xff] }
 0x1d8   :  { %v2702_v4 = vpop.f32.mrf.mxu0  ;;  %v2757_v5 = vpop.f32.mrf.mxu1  ;;  %v4237_v52 = vcombine.high %v385_v34, %v397_v40  ;;  %v4239_v53 = vcombine.high %v386_v42, %v398_v43  ;;  %v373_v59 = vld [vmem:[#allocation8 + $0x160] sm:$0xff]  ;;  %v674_v43 = vld [vmem:[#allocation8 + $0xac8] sm:$0xff] }
 0x1d9   :  { %v3340_v9 = vrot.slane %v3333_v63, %v4819_v32  ;;  %v3376_v10 = vrot.slane %v3369_v0, %v4819_v32  ;;  %v362_v63 = vld [vmem:[#allocation8 + $0x108] sm:$0xff]  ;;  %v4212_v22 = vcombine.low %v361_v58, %v373_v59  ;;  %v685_v42 = vld [vmem:[#allocation8 + $0xb20] sm:$0xff] }
 0x1da   :  { %3106 = vmatpush1.bf16.msra.mxu0 %v4332_v55  ;;  %3161 = vmatpush1.bf16.msra.mxu1 %v4334_v57  ;;  %v2705_v15 = vpop.f32.mrf.mxu0  ;;  %v2760_v16 = vpop.f32.mrf.mxu1  ;;  %v374_v0 = vld [vmem:[#allocation8 + $0x168] sm:$0xff] }
 0x1db   :  { %v3342_v18 = vadd.f32 %v3340_v9, %v3324_v8  ;;  %3107 = vmatprep.subr.bf16.mxu0 %v4309_v60  ;;  %3162 = vmatprep.subr.bf16.mxu1 %v4311_v61  ;;  %v3377_v29 = vcombine.high %v3376_v10, %v3376_v10  ;;  %v4213_v8 = vcombine.high %v361_v58, %v373_v59  ;;  %v349_v16 = vld [vmem:[#allocation8 + $0xa0] sm:$0xff] }
 0x1dc   :  { %3034 = vmatmul.mubr.bf16.gmra.mxu0 %v4777_v3  ;;  %3089 = vmatmul.mubr.bf16.gmra.mxu1 %v4777_v3  ;;  %v2706_v25 = vpop.f32.mrf.mxu0  ;;  %v2761_v26 = vpop.f32.mrf.mxu1  ;;  %v4214_v24 = vcombine.low %v362_v63, %v374_v0  ;;  %v625_v59 = vld [vmem:[#allocation8 + $0x940] sm:$0xff] }
 0x1dd   :  { %v3360_v28 = vadd.f32 %v3358_v17, %v3342_v18  ;;  %3039 = vmatprep.mubr.bf16.mxu0 %v4779_v11  ;;  %3094 = vmatprep.mubr.bf16.mxu1 %v4779_v11  ;;  %v338_v17 = vld [vmem:[#allocation8 + $0x48] sm:$0xff] }
 0x1de   :  { %3108 = vmatpush1.bf16.msra.mxu0 %v4308_v12  ;;  %3163 = vmatpush1.bf16.msra.mxu1 %v4310_v13  ;;  %v2707_v35 = vpop.f32.mrf.mxu0  ;;  %v2762_v36 = vpop.f32.mrf.mxu1  ;;  %v4215_v12 = vcombine.high %v362_v63, %v374_v0  ;;  %v337_v13 = vld [vmem:[#allocation8 + $0x40] sm:$0xff]  ;;  %v350_v18 = vld [vmem:[#allocation8 + $0xa8] sm:$0xff] }
 0x1df   :  { %v4838_v37 = vadd.f32 %v3377_v29, %v3360_v28  ;;  %3109 = vmatprep.subr.bf16.mxu0 %v4285_v14  ;;  %3164 = vmatprep.subr.bf16.mxu1 %v4287_v19  ;;  %v3746_v44 = vrot.slane %v2762_v36, %v4819_v32  ;;  %v3720_v60 = vadd.f32 %v4828_v56, %v2707_v35  ;;  %v697_v28 = vld [vmem:[#allocation8 + $0xb80] sm:$0xff] }
 0x1e0   :  { %v2709_v45 = vpop.f32.mrf.mxu0  ;;  %v2764_v46 = vpop.f32.mrf.mxu1  ;;  %v4236_v56 = vcombine.low %v385_v34, %v397_v40  ;;  %v4189_v25 = vcombine.high %v337_v13, %v349_v16  ;;  %v4191_v26 = vcombine.high %v338_v17, %v350_v18  ;;  %v4188_v34 = vcombine.low %v337_v13, %v349_v16  ;;  %v673_v40 = vld [vmem:[#allocation8 + $0xac0] sm:$0xff] }
 0x1e1   :  { %v3753_v48 = vrot.slane %v3746_v44, %v4819_v32  ;;  %v3728_v49 = vrot.slane %v2709_v45, %v4819_v32  ;;  %v3764_v50 = vrot.slane %v2764_v46, %v4819_v32  ;;  %v4190_v35 = vcombine.low %v338_v17, %v350_v18  ;;  %v686_v44 = vld [vmem:[#allocation8 + $0xb28] sm:$0xff]  ;;  %v589_v13 = vld [vmem:[#allocation8 + $0x820] sm:$0xff] }
 0x1e2   :  { %3110 = vmatpush1.bf16.msra.mxu0 %v4284_v30  ;;  %3165 = vmatpush1.bf16.msra.mxu1 %v4286_v31  ;;  %v2713_v55 = vpop.f32.mrf.mxu0  ;;  %v2768_v57 = vpop.f32.mrf.mxu1  ;;  %v709_v30 = vld [vmem:[#allocation8 + $0xbe0] sm:$0xff]  ;;  %v698_v31 = vld [vmem:[#allocation8 + $0xb88] sm:$0xff] }
 0x1e3   :  { %3111 = vmatprep.subr.bf16.mxu0 %v4261_v33  ;;  %3166 = vmatprep.subr.bf16.mxu1 %v4263_v39  ;;  %v3729_v61 = vcombine.high %v3728_v49, %v3728_v49  ;;  %v3765_v62 = vcombine.high %v3764_v50, %v3764_v50  ;;  %v3754_v4 = vcombine.high %v3753_v48, %v3753_v48  ;;  %v710_v33 = vld [vmem:[#allocation8 + $0xbe8] sm:$0xff]  ;;  %v649_v49 = vld [vmem:[#allocation8 + $0xa00] sm:$0xff] }
 0x1e4   :  { %3040 = vmatmul.mubr.bf16.gmra.mxu0 %v4786_v23  ;;  %3095 = vmatmul.mubr.bf16.gmra.mxu1 %v4786_v23  ;;  %v2714_v1 = vpop.f32.mrf.mxu0  ;;  %v2769_v2 = vpop.f32.mrf.mxu1  ;;  %v4549_v36 = vcombine.high %v697_v28, %v709_v30  ;;  %v4551_v39 = vcombine.high %v698_v31, %v710_v33  ;;  %v4548_v45 = vcombine.low %v697_v28, %v709_v30  ;;  %v661_v50 = vld [vmem:[#allocation8 + $0xa60] sm:$0xff] }
 0x1e5   :  { %3135 = vmatprep.mubr.bf16.mxu0 %v4763_v38  ;;  %3190 = vmatprep.mubr.bf16.mxu1 %v4763_v38  ;;  %v3736_v5 = vrot.slane %v3729_v61, %v4819_v32  ;;  %v3772_v6 = vrot.slane %v3765_v62, %v4819_v32  ;;  %v4550_v46 = vcombine.low %v698_v31, %v710_v33  ;;  %v626_v61 = vld [vmem:[#allocation8 + $0x948] sm:$0xff]  ;;  %v529_v31 = vld [vmem:[#allocation8 + $0x640] sm:$0xff] }
 0x1e6   :  { %3112 = vmatpush1.bf16.msra.mxu0 %v4260_v47  ;;  %3167 = vmatpush1.bf16.msra.mxu1 %v4262_v51  ;;  %v2715_v9 = vpop.f32.mrf.mxu0  ;;  %v2770_v10 = vpop.f32.mrf.mxu1  ;;  %v4525_v47 = vcombine.high %v673_v40, %v685_v42  ;;  %v4527_v48 = vcombine.high %v674_v43, %v686_v44  ;;  %v650_v51 = vld [vmem:[#allocation8 + $0xa08] sm:$0xff]  ;;  %v4526_v55 = vcombine.low %v674_v43, %v686_v44  ;;  %v541_v33 = vld [vmem:[#allocation8 + $0x6a0] sm:$0xff]  ;;  %v507_v43 = vld [vmem:[#allocation8 + $0x590] sm:$0xff] }
 0x1e7   :  { %3113 = vmatprep.subr.bf16.mxu0 %v4237_v52  ;;  %3168 = vmatprep.subr.bf16.mxu1 %v4239_v53  ;;  %v3738_v14 = vadd.f32 %v3736_v5, %v3720_v60  ;;  %v3773_v15 = vcombine.high %v3772_v6, %v3772_v6  ;;  %v662_v52 = vld [vmem:[#allocation8 + $0xa68] sm:$0xff]  ;;  %v4524_v53 = vcombine.low %v673_v40, %v685_v42  ;;  %v637_v60 = vld [vmem:[#allocation8 + $0x9a0] sm:$0xff]  ;;  %v519_v44 = vld [vmem:[#allocation8 + $0x5f0] sm:$0xff] }
 0x1e8   :  { %v2716_v19 = vpop.f32.mrf.mxu0  ;;  %v2771_v20 = vpop.f32.mrf.mxu1  ;;  %v4501_v57 = vcombine.high %v649_v49, %v661_v50  ;;  %v4503_v58 = vcombine.high %v650_v51, %v662_v52  ;;  %v638_v62 = vld [vmem:[#allocation8 + $0x9a8] sm:$0xff]  ;;  %v4500_v63 = vcombine.low %v649_v49, %v661_v50  ;;  %v4502_v0 = vcombine.low %v650_v51, %v662_v52  ;;  %v613_v5 = vld [vmem:[#allocation8 + $0x8e0] sm:$0xff]  ;;  %v483_v51 = vld [vmem:[#allocation8 + $0x4d0] sm:$0xff] }
 0x1e9   :  { %v3756_v21 = vadd.f32 %v3754_v4, %v3738_v14  ;;  %v4477_v1 = vcombine.high %v625_v59, %v637_v60  ;;  %v4479_v2 = vcombine.high %v626_v61, %v638_v62  ;;  %v601_v4 = vld [vmem:[#allocation8 + $0x880] sm:$0xff]  ;;  %v602_v6 = vld [vmem:[#allocation8 + $0x888] sm:$0xff]  ;;  %v4381_v40 = vcombine.high %v529_v31, %v541_v33  ;;  %v495_v52 = vld [vmem:[#allocation8 + $0x530] sm:$0xff] }
 0x1ea   :  { %3114 = vmatpush1.bf16.msra.mxu0 %v4236_v56  ;;  %3169 = vmatpush1.bf16.msra.mxu1 %v4238_v7  ;;  %v614_v56 = vld [vmem:[#allocation8 + $0x8e8] sm:$0xff]  ;;  %v4476_v7 = vcombine.low %v625_v59, %v637_v60  ;;  %v4453_v9 = vcombine.high %v601_v4, %v613_v5  ;;  %v4452_v16 = vcombine.low %v601_v4, %v613_v5  ;;  %v553_v20 = vld [vmem:[#allocation8 + $0x700] sm:$0xff]  ;;  %v4853_v4 = vld [vmem:[#allocation8 + $0x410] sm:$0xff] }
 0x1eb   :  { %3115 = vmatprep.subr.bf16.mxu0 %v4213_v8  ;;  %3170 = vmatprep.subr.bf16.mxu1 %v4215_v12  ;;  %v4851_v29 = vadd.f32 %v3773_v15, %v3756_v21  ;;  %v4478_v8 = vcombine.low %v626_v61, %v638_v62  ;;  %v4455_v10 = vcombine.high %v602_v6, %v614_v56  ;;  %v577_v12 = vld [vmem:[#allocation8 + $0x7c0] sm:$0xff]  ;;  %v578_v14 = vld [vmem:[#allocation8 + $0x7c8] sm:$0xff] }
 0x1ec   :  { %v590_v15 = vld [vmem:[#allocation8 + $0x828] sm:$0xff]  ;;  %v4454_v17 = vcombine.low %v602_v6, %v614_v56  ;;  %v4429_v18 = vcombine.high %v577_v12, %v589_v13  ;;  %v565_v21 = vld [vmem:[#allocation8 + $0x760] sm:$0xff]  ;;  %v4361_v49 = vcombine.high %v507_v43, %v519_v44  ;;  %v4360_v59 = vcombine.low %v507_v43, %v519_v44 }
 0x1ed   :  { %v4431_v19 = vcombine.high %v578_v14, %v590_v15  ;;  %v4405_v28 = vcombine.high %v553_v20, %v565_v21 }
 0x1ee   :  { %3116 = vmatpush1.bf16.msra.mxu0 %v4212_v22  ;;  %3171 = vmatpush1.bf16.msra.mxu1 %v4214_v24  ;;  %v554_v22 = vld [vmem:[#allocation8 + $0x708] sm:$0xff] }
 0x1ef   :  { %3117 = vmatprep.subr.bf16.mxu0 %v4189_v25  ;;  %3172 = vmatprep.subr.bf16.mxu1 %v4191_v26  ;;  %v566_v24 = vld [vmem:[#allocation8 + $0x768] sm:$0xff]  ;;  %v4428_v25 = vcombine.low %v577_v12, %v589_v13  ;;  %v4430_v26 = vcombine.low %v578_v14, %v590_v15  ;;  %v4336_v14 = vcombine.low %v483_v51, %v495_v52 }
 0x1f0   :  { %v4407_v30 = vcombine.high %v554_v22, %v566_v24 }
 0x1f2   :  { %3118 = vmatpush1.bf16.msra.mxu0 %v4188_v34  ;;  %3173 = vmatpush1.bf16.msra.mxu1 %v4190_v35  ;;  %v530_v34 = vld [vmem:[#allocation8 + $0x648] sm:$0xff] }
 0x1f3   :  { %3119 = vmatprep.subr.bf16.mxu0 %v4549_v36  ;;  %3174 = vmatprep.subr.bf16.mxu1 %v4551_v39  ;;  %v542_v35 = vld [vmem:[#allocation8 + $0x6a8] sm:$0xff]  ;;  %v4404_v36 = vcombine.low %v553_v20, %v565_v21  ;;  %v4406_v39 = vcombine.low %v554_v22, %v566_v24  ;;  %v435_v24 = vld [vmem:[#allocation8 + $0x350] sm:$0xff] }
 0x1f4   :  { %v4383_v42 = vcombine.high %v530_v34, %v542_v35 }
 0x1f6   :  { %3120 = vmatpush2.bf16.msra.mxu0 %v4548_v45  ;;  %3175 = vmatpush2.bf16.msra.mxu1 %v4550_v46  ;;  %v508_v45 = vld [vmem:[#allocation8 + $0x598] sm:$0xff] }
 0x1f7   :  { %3121 = vmatprep.subr.bf16.mxu0 %v4525_v47  ;;  %3176 = vmatprep.subr.bf16.mxu1 %v4527_v48  ;;  %v520_v46 = vld [vmem:[#allocation8 + $0x5f8] sm:$0xff]  ;;  %v4380_v47 = vcombine.low %v529_v31, %v541_v33  ;;  %v4382_v48 = vcombine.low %v530_v34, %v542_v35 }
 0x1f8   :  { %v4363_v50 = vcombine.high %v508_v45, %v520_v46  ;;  %v4362_v62 = vcombine.low %v508_v45, %v520_v46  ;;  %v436_v31 = vld [vmem:[#allocation8 + $0x358] sm:$0xff]  ;;  %v4869_v46 = vld [vmem:[#allocation8 + $0x290] sm:$0xff] }
 0x1f9   :  { %v448_v33 = vld [vmem:[#allocation8 + $0x3b8] sm:$0xff] }
 0x1fa   :  { %3122 = vmatpush2.bf16.msra.mxu0 %v4524_v53  ;;  %3177 = vmatpush2.bf16.msra.mxu1 %v4526_v55  ;;  %v484_v53 = vld [vmem:[#allocation8 + $0x4d8] sm:$0xff]  ;;  %v4291_v45 = vcombine.high %v436_v31, %v448_v33 }
 0x1fb   :  { %3123 = vmatprep.subr.bf16.mxu0 %v4501_v57  ;;  %3178 = vmatprep.subr.bf16.mxu1 %v4503_v58  ;;  %v496_v55 = vld [vmem:[#allocation8 + $0x538] sm:$0xff] }
 0x1fe   :  { %3124 = vmatpush2.bf16.msra.mxu0 %v4500_v63  ;;  %3179 = vmatpush2.bf16.msra.mxu1 %v4502_v0 }
 0x1ff   :  { %3125 = vmatprep.subr.bf16.mxu0 %v4477_v1  ;;  %3180 = vmatprep.subr.bf16.mxu1 %v4479_v2  ;;  %v4337_v1 = vcombine.high %v483_v51, %v495_v52  ;;  %v4339_v2 = vcombine.high %v484_v53, %v496_v55  ;;  %v424_v51 = vld [vmem:[#allocation8 + $0x2f8] sm:$0xff] }
 0x202   :  { %3126 = vmatpush2.bf16.msra.mxu0 %v4476_v7  ;;  %3181 = vmatpush2.bf16.msra.mxu1 %v4478_v8  ;;  %v471_v7 = vld [vmem:[#allocation8 + $0x470] sm:$0xff]  ;;  %v460_v8 = vld [vmem:[#allocation8 + $0x418] sm:$0xff] }
 0x203   :  { %3127 = vmatprep.subr.bf16.mxu0 %v4453_v9  ;;  %3182 = vmatprep.subr.bf16.mxu1 %v4455_v10  ;;  %v472_v9 = vld [vmem:[#allocation8 + $0x478] sm:$0xff]  ;;  %v4313_v21 = vcombine.high %v4853_v4, %v471_v7 }
 0x204   :  { %v4315_v22 = vcombine.high %v460_v8, %v472_v9 }
 0x206   :  { %3128 = vmatpush2.bf16.msra.mxu0 %v4452_v16  ;;  %3183 = vmatpush2.bf16.msra.mxu1 %v4454_v17  ;;  %v4338_v17 = vcombine.low %v484_v53, %v496_v55 }
 0x207   :  { %3129 = vmatprep.subr.bf16.mxu0 %v4429_v18  ;;  %3184 = vmatprep.subr.bf16.mxu1 %v4431_v19 }
 0x20a   :  { %3130 = vmatpush2.bf16.msra.mxu0 %v4428_v25  ;;  %3185 = vmatpush2.bf16.msra.mxu1 %v4430_v26 }
 0x20b   :  { %3131 = vmatprep.subr.bf16.mxu0 %v4405_v28  ;;  %3186 = vmatprep.subr.bf16.mxu1 %v4407_v30  ;;  %v447_v30 = vld [vmem:[#allocation8 + $0x3b0] sm:$0xff] }
 0x20c   :  { %v4289_v44 = vcombine.high %v435_v24, %v447_v30 }
 0x20e   :  { %3132 = vmatpush2.bf16.msra.mxu0 %v4404_v36  ;;  %3187 = vmatpush2.bf16.msra.mxu1 %v4406_v39 }
 0x20f   :  { %3133 = vmatprep.subr.bf16.mxu0 %v4381_v40  ;;  %3188 = vmatprep.subr.bf16.mxu1 %v4383_v42  ;;  %v4312_v40 = vcombine.low %v4853_v4, %v471_v7  ;;  %v4314_v42 = vcombine.low %v460_v8, %v472_v9  ;;  %v399_v8 = vld [vmem:[#allocation8 + $0x230] sm:$0xff]  ;;  %v388_v9 = vld [vmem:[#allocation8 + $0x1d8] sm:$0xff] }
 0x212   :  { %3134 = vmatpush2.bf16.msra.mxu0 %v4380_v47  ;;  %3189 = vmatpush2.bf16.msra.mxu1 %v4382_v48  ;;  %v2807_v57 = vpop.f32.mrf.mxu0  ;;  %v2862_v58 = vpop.f32.mrf.mxu1 }
 0x213   :  { %v3381_v60 = vcombine.high %v2807_v57, %v2807_v57  ;;  %v3418_v61 = vcombine.high %v2862_v58, %v2862_v58  ;;  %3213 = vmatprep.subr.bf16.mxu0 %v4361_v49  ;;  %3268 = vmatprep.subr.bf16.mxu1 %v4363_v50  ;;  %v423_v49 = vld [vmem:[#allocation8 + $0x2f0] sm:$0xff]  ;;  %v412_v50 = vld [vmem:[#allocation8 + $0x298] sm:$0xff]  ;;  %v4288_v57 = vcombine.low %v435_v24, %v447_v30 }
 0x214   :  { %v2809_v63 = vpop.f32.mrf.mxu0  ;;  %v2864_v0 = vpop.f32.mrf.mxu1  ;;  %v4290_v58 = vcombine.low %v436_v31, %v448_v33  ;;  %v375_v31 = vld [vmem:[#allocation8 + $0x170] sm:$0xff]  ;;  %v364_v33 = vld [vmem:[#allocation8 + $0x118] sm:$0xff] }
 0x215   :  { %v3388_v5 = vrot.slane %v3381_v60, %v4819_v32  ;;  %v3425_v6 = vrot.slane %v3418_v61, %v4819_v32  ;;  %3136 = vmatmul.mubr.bf16.vlgmr.msra.gmra.mxu0 %v4767_v41  ;;  %3191 = vmatmul.mubr.bf16.vlgmr.msra.gmra.mxu1 %v4767_v41  ;;  %v3399_v56 = vcombine.high %v2809_v63, %v2809_v63 }
 0x216   :  { %3141 = vmatprep.mubr.bf16.mxu0 %v4773_v54  ;;  %3196 = vmatprep.mubr.bf16.mxu1 %v4773_v54  ;;  %v3437_v10 = vcombine.high %v2864_v0, %v2864_v0  ;;  %v2811_v12 = vpop.f32.mrf.mxu0  ;;  %v2866_v13 = vpop.f32.mrf.mxu1  ;;  %v4265_v0 = vcombine.high %v4869_v46, %v423_v49 }
 0x217   :  { %v3395_v15 = vrot.slane %v3388_v5, %v4819_v32  ;;  %3214 = vmatpush1.bf16.msra.mxu0 %v4360_v59  ;;  %3269 = vmatpush1.bf16.msra.mxu1 %v4362_v62  ;;  %v3406_v16 = vrot.slane %v3399_v56, %v4819_v32  ;;  %v3432_v26 = vrot.slane %v3425_v6, %v4819_v32 }
 0x218   :  { %v3444_v18 = vrot.slane %v3437_v10, %v4819_v32  ;;  %3215 = vmatprep.subr.bf16.mxu0 %v4337_v1  ;;  %3270 = vmatprep.subr.bf16.mxu1 %v4339_v2  ;;  %v2812_v19 = vpop.f32.mrf.mxu0  ;;  %v2867_v20 = vpop.f32.mrf.mxu1  ;;  %v4267_v1 = vcombine.high %v412_v50, %v424_v51  ;;  %v387_v2 = vld [vmem:[#allocation8 + $0x1d0] sm:$0xff]  ;;  %v400_v10 = vld [vmem:[#allocation8 + $0x238] sm:$0xff] }
 0x219   :  { %v3397_v25 = vadd.f32 %v3395_v15, %v4838_v37  ;;  %v3407_v28 = vcombine.high %v3406_v16, %v3406_v16  ;;  %v3433_v48 = vcombine.high %v3432_v26, %v3432_v26  ;;  %v4243_v24 = vcombine.high %v388_v9, %v400_v10 }
 0x21a   :  { %v3445_v34 = vcombine.high %v3444_v18, %v3444_v18  ;;  %v2815_v35 = vpop.f32.mrf.mxu0  ;;  %v2870_v36 = vpop.f32.mrf.mxu1  ;;  %v4266_v18 = vcombine.low %v412_v50, %v424_v51  ;;  %v352_v50 = vld [vmem:[#allocation8 + $0xb8] sm:$0xff] }
 0x21b   :  { %v3414_v39 = vrot.slane %v3407_v28, %v4819_v32  ;;  %3216 = vmatpush1.bf16.msra.mxu0 %v4336_v14  ;;  %3271 = vmatpush1.bf16.msra.mxu1 %v4338_v17  ;;  %v4264_v14 = vcombine.low %v4869_v46, %v423_v49  ;;  %v339_v46 = vld [vmem:[#allocation8 + $0x50] sm:$0xff] }
 0x21c   :  { %3217 = vmatprep.subr.bf16.mxu0 %v4313_v21  ;;  %3272 = vmatprep.subr.bf16.mxu1 %v4315_v22  ;;  %v2816_v43 = vpop.f32.mrf.mxu0  ;;  %v2871_v37 = vpop.f32.mrf.mxu1  ;;  %v3452_v47 = vrot.slane %v3445_v34, %v4819_v32  ;;  %v4241_v22 = vcombine.high %v387_v2, %v399_v8  ;;  %v376_v34 = vld [vmem:[#allocation8 + $0x178] sm:$0xff]  ;;  %v351_v49 = vld [vmem:[#allocation8 + $0xb0] sm:$0xff] }
 0x21d   :  { %3142 = vmatmul.mubr.bf16.gmra.mxu0 %v4777_v3  ;;  %3197 = vmatmul.mubr.bf16.gmra.mxu1 %v4777_v3  ;;  %v3416_v52 = vadd.f32 %v3414_v39, %v3397_v25  ;;  %v363_v25 = vld [vmem:[#allocation8 + $0x110] sm:$0xff] }
 0x21e   :  { %3149 = vmatprep.mubr.bf16.mxu0 %v4779_v11  ;;  %3204 = vmatprep.mubr.bf16.mxu1 %v4779_v11  ;;  %v2817_v53 = vpop.f32.mrf.mxu0  ;;  %v2872_v55 = vpop.f32.mrf.mxu1  ;;  %v3453_v4 = vcombine.high %v3452_v47, %v3452_v47 }
 0x21f   :  { %3218 = vmatpush1.bf16.msra.mxu0 %v4312_v40  ;;  %3273 = vmatpush1.bf16.msra.mxu1 %v4314_v42  ;;  %v3777_v59 = vcombine.high %v2817_v53, %v2817_v53  ;;  %v3814_v60 = vcombine.high %v2872_v55, %v2872_v55  ;;  %v3435_v61 = vadd.f32 %v3433_v48, %v3416_v52 }
 0x220   :  { %3219 = vmatprep.subr.bf16.mxu0 %v4289_v44  ;;  %3274 = vmatprep.subr.bf16.mxu1 %v4291_v45  ;;  %v2819_v62 = vpop.f32.mrf.mxu0  ;;  %v2874_v63 = vpop.f32.mrf.mxu1  ;;  %v4242_v42 = vcombine.low %v388_v9, %v400_v10  ;;  %v4217_v44 = vcombine.high %v363_v25, %v375_v31  ;;  %v4219_v45 = vcombine.high %v364_v33, %v376_v34 }
 0x221   :  { %v3784_v5 = vrot.slane %v3777_v59, %v4819_v32  ;;  %v3821_v6 = vrot.slane %v3814_v60, %v4819_v32  ;;  %v3795_v56 = vcombine.high %v2819_v62, %v2819_v62  ;;  %v3833_v7 = vcombine.high %v2874_v63, %v2874_v63  ;;  %v699_v60 = vld [vmem:[#allocation8 + $0xb90] sm:$0xff]  ;;  %v700_v62 = vld [vmem:[#allocation8 + $0xb98] sm:$0xff] }
 0x222   :  { %v2823_v12 = vpop.f32.mrf.mxu0  ;;  %v2878_v13 = vpop.f32.mrf.mxu1  ;;  %v4880_v15 = vadd.f32 %v3453_v4, %v3435_v61  ;;  %v4216_v52 = vcombine.low %v363_v25, %v375_v31  ;;  %v4218_v53 = vcombine.low %v364_v33, %v376_v34  ;;  %v711_v61 = vld [vmem:[#allocation8 + $0xbf0] sm:$0xff]  ;;  %v712_v63 = vld [vmem:[#allocation8 + $0xbf8] sm:$0xff] }
 0x223   :  { %v3791_v16 = vrot.slane %v3784_v5, %v4819_v32  ;;  %3220 = vmatpush1.bf16.msra.mxu0 %v4288_v57  ;;  %3275 = vmatpush1.bf16.msra.mxu1 %v4290_v58  ;;  %v3802_v17 = vrot.slane %v3795_v56, %v4819_v32  ;;  %v3840_v19 = vrot.slane %v3833_v7, %v4819_v32  ;;  %v687_v56 = vld [vmem:[#allocation8 + $0xb30] sm:$0xff]  ;;  %v676_v7 = vld [vmem:[#allocation8 + $0xad8] sm:$0xff] }
 0x224   :  { %3221 = vmatprep.subr.bf16.mxu0 %v4265_v0  ;;  %3276 = vmatprep.subr.bf16.mxu1 %v4267_v1  ;;  %v2824_v20 = vpop.f32.mrf.mxu0  ;;  %v2879_v21 = vpop.f32.mrf.mxu1  ;;  %v3828_v28 = vrot.slane %v3821_v6, %v4819_v32  ;;  %v4193_v58 = vcombine.high %v339_v46, %v351_v49  ;;  %v4192_v1 = vcombine.low %v339_v46, %v351_v49  ;;  %v675_v6 = vld [vmem:[#allocation8 + $0xad0] sm:$0xff]  ;;  %v580_v46 = vld [vmem:[#allocation8 + $0x7d8] sm:$0xff] }
 0x225   :  { %v3793_v26 = vadd.f32 %v3791_v16, %v4851_v29  ;;  %v3803_v30 = vcombine.high %v3802_v17, %v3802_v17  ;;  %3150 = vmatmul.mubr.bf16.gmra.mxu0 %v4786_v23  ;;  %3205 = vmatmul.mubr.bf16.gmra.mxu1 %v4786_v23  ;;  %v3841_v35 = vcombine.high %v3840_v19, %v3840_v19  ;;  %v663_v16 = vld [vmem:[#allocation8 + $0xa70] sm:$0xff]  ;;  %v652_v17 = vld [vmem:[#allocation8 + $0xa18] sm:$0xff] }
 0x226   :  { %3245 = vmatprep.mubr.bf16.mxu0 %v4763_v38  ;;  %3300 = vmatprep.mubr.bf16.mxu1 %v4763_v38  ;;  %v2825_v36 = vpop.f32.mrf.mxu0  ;;  %v2880_v39 = vpop.f32.mrf.mxu1  ;;  %v4240_v29 = vcombine.low %v387_v2, %v399_v8  ;;  %v3829_v48 = vcombine.high %v3828_v28, %v3828_v28  ;;  %v340_v38 = vld [vmem:[#allocation8 + $0x58] sm:$0xff]  ;;  %v4553_v4 = vcombine.high %v699_v60, %v711_v61  ;;  %v639_v25 = vld [vmem:[#allocation8 + $0x9b0] sm:$0xff] }
 0x227   :  { %v3810_v40 = vrot.slane %v3803_v30, %v4819_v32  ;;  %3222 = vmatpush1.bf16.msra.mxu0 %v4264_v14  ;;  %3277 = vmatpush1.bf16.msra.mxu1 %v4266_v18  ;;  %v3848_v47 = vrot.slane %v3841_v35, %v4819_v32  ;;  %v4195_v59 = vcombine.high %v340_v38, %v352_v50  ;;  %v688_v8 = vld [vmem:[#allocation8 + $0xb38] sm:$0xff]  ;;  %v651_v14 = vld [vmem:[#allocation8 + $0xa10] sm:$0xff] }
 0x228   :  { %3223 = vmatprep.subr.bf16.mxu0 %v4241_v22  ;;  %3278 = vmatprep.subr.bf16.mxu1 %v4243_v24  ;;  %v2826_v43 = vpop.f32.mrf.mxu0  ;;  %v2881_v37 = vpop.f32.mrf.mxu1  ;;  %v4194_v2 = vcombine.low %v340_v38, %v352_v50  ;;  %v4555_v5 = vcombine.high %v700_v62, %v712_v63  ;;  %v4552_v9 = vcombine.low %v699_v60, %v711_v61  ;;  %v664_v18 = vld [vmem:[#allocation8 + $0xa78] sm:$0xff]  ;;  %v627_v24 = vld [vmem:[#allocation8 + $0x950] sm:$0xff] }
 0x229   :  { %v3812_v51 = vadd.f32 %v3810_v40, %v3793_v26  ;;  %v3849_v57 = vcombine.high %v3848_v47, %v3848_v47  ;;  %v4554_v10 = vcombine.low %v700_v62, %v712_v63  ;;  %v4529_v12 = vcombine.high %v675_v6, %v687_v56  ;;  %v628_v26 = vld [vmem:[#allocation8 + $0x958] sm:$0xff]  ;;  %v603_v35 = vld [vmem:[#allocation8 + $0x890] sm:$0xff] }
 0x22a   :  { %v4531_v13 = vcombine.high %v676_v7, %v688_v8  ;;  %v4528_v19 = vcombine.low %v675_v6, %v687_v56  ;;  %v4530_v20 = vcombine.low %v676_v7, %v688_v8  ;;  %v4505_v21 = vcombine.high %v651_v14, %v663_v16  ;;  %v640_v28 = vld [vmem:[#allocation8 + $0x9b8] sm:$0xff]  ;;  %v615_v36 = vld [vmem:[#allocation8 + $0x8f0] sm:$0xff] }
 0x22b   :  { %3224 = vmatpush1.bf16.msra.mxu0 %v4240_v29  ;;  %3279 = vmatpush1.bf16.msra.mxu1 %v4242_v42  ;;  %v3831_v55 = vadd.f32 %v3829_v48, %v3812_v51  ;;  %v4507_v22 = vcombine.high %v652_v17, %v664_v18  ;;  %v4504_v30 = vcombine.low %v651_v14, %v663_v16  ;;  %v604_v39 = vld [vmem:[#allocation8 + $0x898] sm:$0xff]  ;;  %v555_v51 = vld [vmem:[#allocation8 + $0x710] sm:$0xff] }
 0x22c   :  { %3225 = vmatprep.subr.bf16.mxu0 %v4217_v44  ;;  %3280 = vmatprep.subr.bf16.mxu1 %v4219_v45  ;;  %v4506_v31 = vcombine.low %v652_v17, %v664_v18  ;;  %v4481_v33 = vcombine.high %v627_v24, %v639_v25  ;;  %v4483_v34 = vcombine.high %v628_v26, %v640_v28  ;;  %v616_v40 = vld [vmem:[#allocation8 + $0x8f8] sm:$0xff]  ;;  %v579_v44 = vld [vmem:[#allocation8 + $0x7d0] sm:$0xff] }
 0x22d   :  { %v4893_v0 = vadd.f32 %v3849_v57, %v3831_v55  ;;  %v4480_v29 = vcombine.low %v627_v24, %v639_v25  ;;  %v4482_v42 = vcombine.low %v628_v26, %v640_v28  ;;  %v4457_v43 = vcombine.high %v603_v35, %v615_v36  ;;  %v591_v45 = vld [vmem:[#allocation8 + $0x830] sm:$0xff]  ;;  %v592_v47 = vld [vmem:[#allocation8 + $0x838] sm:$0xff] }
 0x22e   :  { %v4459_v37 = vcombine.high %v604_v39, %v616_v40  ;;  %v4456_v48 = vcombine.low %v603_v35, %v615_v36  ;;  %v4458_v49 = vcombine.low %v604_v39, %v616_v40  ;;  %v4433_v38 = vcombine.high %v579_v44, %v591_v45  ;;  %v568_v55 = vld [vmem:[#allocation8 + $0x778] sm:$0xff]  ;;  %v531_v61 = vld [vmem:[#allocation8 + $0x650] sm:$0xff] }
 0x22f   :  { %3226 = vmatpush1.bf16.msra.mxu0 %v4216_v52  ;;  %3281 = vmatpush1.bf16.msra.mxu1 %v4218_v53  ;;  %v4435_v50 = vcombine.high %v580_v46, %v592_v47  ;;  %v567_v52 = vld [vmem:[#allocation8 + $0x770] sm:$0xff]  ;;  %v556_v53 = vld [vmem:[#allocation8 + $0x718] sm:$0xff]  ;;  %v4432_v57 = vcombine.low %v579_v44, %v591_v45 }
 0x230   :  { %3227 = vmatprep.subr.bf16.mxu0 %v4193_v58  ;;  %3282 = vmatprep.subr.bf16.mxu1 %v4195_v59  ;;  %v4434_v58 = vcombine.low %v580_v46, %v592_v47  ;;  %v4409_v59 = vcombine.high %v555_v51, %v567_v52  ;;  %v4411_v60 = vcombine.high %v556_v53, %v568_v55  ;;  %v543_v62 = vld [vmem:[#allocation8 + $0x6b0] sm:$0xff]  ;;  %v532_v63 = vld [vmem:[#allocation8 + $0x658] sm:$0xff] }
 0x231   :  { %v4384_v56 = vcombine.low %v531_v61, %v543_v62 }
 0x233   :  { %3228 = vmatpush1.bf16.msra.mxu0 %v4192_v1  ;;  %3283 = vmatpush1.bf16.msra.mxu1 %v4194_v2  ;;  %v544_v1 = vld [vmem:[#allocation8 + $0x6b8] sm:$0xff]  ;;  %v4408_v2 = vcombine.low %v555_v51, %v567_v52 }
 0x234   :  { %3229 = vmatprep.subr.bf16.mxu0 %v4553_v4  ;;  %3284 = vmatprep.subr.bf16.mxu1 %v4555_v5  ;;  %v4410_v4 = vcombine.low %v556_v53, %v568_v55  ;;  %v4385_v5 = vcombine.high %v531_v61, %v543_v62  ;;  %v4387_v6 = vcombine.high %v532_v63, %v544_v1 }
 0x235   :  { %v4386_v7 = vcombine.low %v532_v63, %v544_v1 }
 0x237   :  { %3230 = vmatpush2.bf16.msra.mxu0 %v4552_v9  ;;  %3285 = vmatpush2.bf16.msra.mxu1 %v4554_v10 }
 0x238   :  { %3231 = vmatprep.subr.bf16.mxu0 %v4529_v12  ;;  %3286 = vmatprep.subr.bf16.mxu1 %v4531_v13 }
 0x23b   :  { %3232 = vmatpush2.bf16.msra.mxu0 %v4528_v19  ;;  %3287 = vmatpush2.bf16.msra.mxu1 %v4530_v20 }
 0x23c   :  { %3233 = vmatprep.subr.bf16.mxu0 %v4505_v21  ;;  %3288 = vmatprep.subr.bf16.mxu1 %v4507_v22 }
 0x23f   :  { %3234 = vmatpush2.bf16.msra.mxu0 %v4504_v30  ;;  %3289 = vmatpush2.bf16.msra.mxu1 %v4506_v31 }
 0x240   :  { %3235 = vmatprep.subr.bf16.mxu0 %v4481_v33  ;;  %3290 = vmatprep.subr.bf16.mxu1 %v4483_v34 }
 0x243   :  { %3236 = vmatpush2.bf16.msra.mxu0 %v4480_v29  ;;  %3291 = vmatpush2.bf16.msra.mxu1 %v4482_v42 }
 0x244   :  { %3237 = vmatprep.subr.bf16.mxu0 %v4457_v43  ;;  %3292 = vmatprep.subr.bf16.mxu1 %v4459_v37 }
 0x247   :  { %3238 = vmatpush2.bf16.msra.mxu0 %v4456_v48  ;;  %3293 = vmatpush2.bf16.msra.mxu1 %v4458_v49 }
 0x248   :  { %3239 = vmatprep.subr.bf16.mxu0 %v4433_v38  ;;  %3294 = vmatprep.subr.bf16.mxu1 %v4435_v50 }
 0x24b   :  { %3240 = vmatpush2.bf16.msra.mxu0 %v4432_v57  ;;  %3295 = vmatpush2.bf16.msra.mxu1 %v4434_v58 }
 0x24c   :  { %3241 = vmatprep.subr.bf16.mxu0 %v4409_v59  ;;  %3296 = vmatprep.subr.bf16.mxu1 %v4411_v60 }
 0x24f   :  { %3242 = vmatpush2.bf16.msra.mxu0 %v4408_v2  ;;  %3297 = vmatpush2.bf16.msra.mxu1 %v4410_v4 }
 0x250   :  { %3243 = vmatprep.subr.bf16.mxu0 %v4385_v5  ;;  %3298 = vmatprep.subr.bf16.mxu1 %v4387_v6 }
 0x253   :  { %3244 = vmatpush2.bf16.msra.mxu0 %v4384_v56  ;;  %3299 = vmatpush2.bf16.msra.mxu1 %v4386_v7  ;;  %v2917_v8 = vpop.f32.mrf.mxu0  ;;  %v2972_v9 = vpop.f32.mrf.mxu1 }
 0x255   :  { %v2918_v10 = vpop.f32.mrf.mxu0  ;;  %v2973_v12 = vpop.f32.mrf.mxu1 }
 0x256   :  { %3246 = vmatmul.mubr.bf16.vlgmr.msra.gmra.mxu0 %v4767_v41  ;;  %3301 = vmatmul.mubr.bf16.vlgmr.msra.gmra.mxu1 %v4767_v41 }
 0x257   :  { %3251 = vmatprep.mubr.bf16.mxu0 %v4773_v54  ;;  %3306 = vmatprep.mubr.bf16.mxu1 %v4773_v54  ;;  %v2919_v13 = vpop.f32.mrf.mxu0  ;;  %v2974_v14 = vpop.f32.mrf.mxu1 }
 0x258   :  { %v3456_v16 = vadd.f32 %v4880_v15, %v2919_v13  ;;  %v3482_v17 = vrot.slane %v2974_v14, %v4819_v32 }
 0x259   :  { %v2921_v18 = vpop.f32.mrf.mxu0  ;;  %v2976_v19 = vpop.f32.mrf.mxu1 }
 0x25a   :  { %v3464_v20 = vrot.slane %v2921_v18, %v4819_v32  ;;  %v3500_v21 = vrot.slane %v2976_v19, %v4819_v32  ;;  %v3489_v41 = vrot.slane %v3482_v17, %v4819_v32 }
 0x25b   :  { %v2925_v22 = vpop.f32.mrf.mxu0  ;;  %v2980_v24 = vpop.f32.mrf.mxu1 }
 0x25c   :  { %v3465_v25 = vcombine.high %v3464_v20, %v3464_v20  ;;  %v3501_v26 = vcombine.high %v3500_v21, %v3500_v21  ;;  %v3490_v34 = vcombine.high %v3489_v41, %v3489_v41 }
 0x25d   :  { %v2926_v28 = vpop.f32.mrf.mxu0  ;;  %v2981_v54 = vpop.f32.mrf.mxu1 }
 0x25e   :  { %v3472_v30 = vrot.slane %v3465_v25, %v4819_v32  ;;  %v3508_v15 = vrot.slane %v3501_v26, %v4819_v32  ;;  %3252 = vmatmul.mubr.bf16.gmra.mxu0 %v4777_v3  ;;  %3307 = vmatmul.mubr.bf16.gmra.mxu1 %v4777_v3 }
 0x25f   :  { %3259 = vmatprep.mubr.bf16.mxu0 %v4779_v11  ;;  %3314 = vmatprep.mubr.bf16.mxu1 %v4779_v11  ;;  %v2927_v31 = vpop.f32.mrf.mxu0  ;;  %v2982_v33 = vpop.f32.mrf.mxu1 }
 0x260   :  { %v3474_v35 = vadd.f32 %v3472_v30, %v3456_v16  ;;  %v3509_v29 = vcombine.high %v3508_v15, %v3508_v15 }
 0x261   :  { %v2928_v36 = vpop.f32.mrf.mxu0  ;;  %v2983_v39 = vpop.f32.mrf.mxu1 }
 0x262   :  { %v3492_v40 = vadd.f32 %v3490_v34, %v3474_v35 }
 0x263   :  { %v2931_v42 = vpop.f32.mrf.mxu0  ;;  %v2986_v43 = vpop.f32.mrf.mxu1 }
 0x264   :  { %v3511_v37 = vadd.f32 %v3509_v29, %v3492_v40  ;;  %v3852_v44 = vadd.f32 %v4893_v0, %v2931_v42  ;;  %v3878_v45 = vrot.slane %v2986_v43, %v4819_v32 }
 0x265   :  { %v2933_v3 = vpop.f32.mrf.mxu0  ;;  %v2988_v46 = vpop.f32.mrf.mxu1 }
 0x266   :  { %3260 = vmatmul.mubr.bf16.gmra.mxu0 %v4786_v23  ;;  %3315 = vmatmul.mubr.bf16.gmra.mxu1 %v4786_v23  ;;  %v3860_v11 = vrot.slane %v2933_v3, %v4819_v32  ;;  %v3896_v47 = vrot.slane %v2988_v46, %v4819_v32  ;;  %v3885_v38 = vrot.slane %v3878_v45, %v4819_v32 }
 0x267   :  { %v2935_v48 = vpop.f32.mrf.mxu0  ;;  %v2990_v49 = vpop.f32.mrf.mxu1 }
 0x268   :  { %v3861_v50 = vcombine.high %v3860_v11, %v3860_v11  ;;  %v3897_v51 = vcombine.high %v3896_v47, %v3896_v47  ;;  %v3886_v57 = vcombine.high %v3885_v38, %v3885_v38 }
 0x269   :  { %v2936_v52 = vpop.f32.mrf.mxu0  ;;  %v2991_v0 = vpop.f32.mrf.mxu1 }
 0x26a   :  { %v3868_v53 = vrot.slane %v3861_v50, %v4819_v32  ;;  %v3904_v55 = vrot.slane %v3897_v51, %v4819_v32 }
 0x26c   :  { %v3870_v58 = vadd.f32 %v3868_v53, %v3852_v44  ;;  %v3905_v23 = vcombine.high %v3904_v55, %v3904_v55 }
 0x26e   :  { %v3888_v59 = vadd.f32 %v3886_v57, %v3870_v58 }
 0x270   :  { %v3907_v60 = vadd.f32 %v3905_v23, %v3888_v59 }
 0x294   :  { %v3027_v61 = vpop.f32.mrf.mxu0  ;;  %v3082_v62 = vpop.f32.mrf.mxu1 }
 0x296   :  { %v3028_v63 = vpop.f32.mrf.mxu0  ;;  %v3083_v1 = vpop.f32.mrf.mxu1 }
 0x298   :  { %v3029_v2 = vpop.f32.mrf.mxu0  ;;  %v3084_v4 = vpop.f32.mrf.mxu1 }
 0x299   :  { %v3513_v5 = vcombine.high %v3029_v2, %v3029_v2  ;;  %v3550_v6 = vcombine.high %v3084_v4, %v3084_v4 }
 0x29a   :  { %v3031_v56 = vpop.f32.mrf.mxu0  ;;  %v3086_v7 = vpop.f32.mrf.mxu1 }
 0x29b   :  { %v3520_v8 = vrot.slane %v3513_v5, %v4819_v32  ;;  %v3557_v9 = vrot.slane %v3550_v6, %v4819_v32  ;;  %v3531_v10 = vcombine.high %v3031_v56, %v3031_v56  ;;  %v3569_v12 = vcombine.high %v3086_v7, %v3086_v7 }
 0x29c   :  { %v3035_v13 = vpop.f32.mrf.mxu0  ;;  %v3090_v14 = vpop.f32.mrf.mxu1 }
 0x29d   :  { %v3527_v16 = vrot.slane %v3520_v8, %v4819_v32  ;;  %v3538_v17 = vrot.slane %v3531_v10, %v4819_v32  ;;  %v3576_v18 = vrot.slane %v3569_v12, %v4819_v32  ;;  %v3564_v22 = vrot.slane %v3557_v9, %v4819_v32 }
 0x29e   :  { %v3036_v19 = vpop.f32.mrf.mxu0  ;;  %v3091_v20 = vpop.f32.mrf.mxu1 }
 0x29f   :  { %v3529_v21 = vadd.f32 %v3527_v16, %v3511_v37  ;;  %v3539_v24 = vcombine.high %v3538_v17, %v3538_v17  ;;  %v3577_v41 = vcombine.high %v3576_v18, %v3576_v18  ;;  %v3565_v31 = vcombine.high %v3564_v22, %v3564_v22 }
 0x2a0   :  { %v3037_v25 = vpop.f32.mrf.mxu0  ;;  %v3092_v26 = vpop.f32.mrf.mxu1 }
 0x2a1   :  { %v3546_v28 = vrot.slane %v3539_v24, %v4819_v32  ;;  %v3584_v15 = vrot.slane %v3577_v41, %v4819_v32 }
 0x2a2   :  { %v3038_v54 = vpop.f32.mrf.mxu0  ;;  %v3093_v30 = vpop.f32.mrf.mxu1 }
 0x2a3   :  { %v3548_v33 = vadd.f32 %v3546_v28, %v3529_v21  ;;  %v3585_v43 = vcombine.high %v3584_v15, %v3584_v15 }
 0x2a4   :  { %v3041_v34 = vpop.f32.mrf.mxu0  ;;  %v3096_v35 = vpop.f32.mrf.mxu1 }
 0x2a5   :  { %v3909_v36 = vcombine.high %v3041_v34, %v3041_v34  ;;  %v3946_v39 = vcombine.high %v3096_v35, %v3096_v35  ;;  %v3567_v40 = vadd.f32 %v3565_v31, %v3548_v33 }
 0x2a6   :  { %v3043_v29 = vpop.f32.mrf.mxu0  ;;  %v3098_v42 = vpop.f32.mrf.mxu1 }
 0x2a7   :  { %v3916_v37 = vrot.slane %v3909_v36, %v4819_v32  ;;  %v3953_v44 = vrot.slane %v3946_v39, %v4819_v32  ;;  %v3927_v45 = vcombine.high %v3043_v29, %v3043_v29  ;;  %v3965_v3 = vcombine.high %v3098_v42, %v3098_v42 }
 0x2a8   :  { %v3045_v46 = vpop.f32.mrf.mxu0  ;;  %v3100_v11 = vpop.f32.mrf.mxu1  ;;  %v3587_v47 = vadd.f32 %v3585_v43, %v3567_v40 }
 0x2a9   :  { %v3923_v48 = vrot.slane %v3916_v37, %v4819_v32  ;;  %v3934_v49 = vrot.slane %v3927_v45, %v4819_v32  ;;  %v3972_v38 = vrot.slane %v3965_v3, %v4819_v32  ;;  %v3960_v0 = vrot.slane %v3953_v44, %v4819_v32 }
 0x2aa   :  { %v3046_v50 = vpop.f32.mrf.mxu0  ;;  %v3101_v51 = vpop.f32.mrf.mxu1 }
 0x2ab   :  { %v3925_v52 = vadd.f32 %v3923_v48, %v3907_v60  ;;  %v3935_v53 = vcombine.high %v3934_v49, %v3934_v49  ;;  %v3973_v55 = vcombine.high %v3972_v38, %v3972_v38  ;;  %v3961_v59 = vcombine.high %v3960_v0, %v3960_v0 }
 0x2ad   :  { %v3942_v57 = vrot.slane %v3935_v53, %v4819_v32  ;;  %v3980_v58 = vrot.slane %v3973_v55, %v4819_v32 }
 0x2af   :  { %v3944_v23 = vadd.f32 %v3942_v57, %v3925_v52  ;;  %v3981_v62 = vcombine.high %v3980_v58, %v3980_v58 }
 0x2b1   :  { %v3963_v61 = vadd.f32 %v3961_v59, %v3944_v23 }
 0x2b3   :  { %v3983_v63 = vadd.f32 %v3981_v62, %v3963_v61 }
 0x2d5   :  { %v3137_v1 = vpop.f32.mrf.mxu0  ;;  %v3192_v2 = vpop.f32.mrf.mxu1 }
 0x2d7   :  { %v3138_v4 = vpop.f32.mrf.mxu0  ;;  %v3193_v5 = vpop.f32.mrf.mxu1 }
 0x2d9   :  { %v3139_v6 = vpop.f32.mrf.mxu0  ;;  %v3194_v56 = vpop.f32.mrf.mxu1 }
 0x2db   :  { %v3140_v60 = vpop.f32.mrf.mxu0  ;;  %v3195_v7 = vpop.f32.mrf.mxu1 }
 0x2dd   :  { %v3143_v8 = vpop.f32.mrf.mxu0  ;;  %v3198_v9 = vpop.f32.mrf.mxu1 }
 0x2de   :  { %v3588_v10 = vadd.f32 %v3587_v47, %v3143_v8  ;;  %v3614_v12 = vrot.slane %v3198_v9, %v4819_v32 }
 0x2df   :  { %v3145_v13 = vpop.f32.mrf.mxu0  ;;  %v3200_v14 = vpop.f32.mrf.mxu1 }
 0x2e0   :  { %v3596_v16 = vrot.slane %v3145_v13, %v4819_v32  ;;  %v3632_v17 = vrot.slane %v3200_v14, %v4819_v32  ;;  %v3621_v20 = vrot.slane %v3614_v12, %v4819_v32 }
 0x2e1   :  { %v3147_v18 = vpop.f32.mrf.mxu0  ;;  %v3202_v19 = vpop.f32.mrf.mxu1 }
 0x2e2   :  { %v3597_v21 = vcombine.high %v3596_v16, %v3596_v16  ;;  %v3633_v22 = vcombine.high %v3632_v17, %v3632_v17  ;;  %v3622_v30 = vcombine.high %v3621_v20, %v3621_v20 }
 0x2e3   :  { %v3148_v24 = vpop.f32.mrf.mxu0  ;;  %v3203_v41 = vpop.f32.mrf.mxu1 }
 0x2e4   :  { %v3604_v25 = vrot.slane %v3597_v21, %v4819_v32  ;;  %v3640_v26 = vrot.slane %v3633_v22, %v4819_v32 }
 0x2e5   :  { %v3151_v28 = vpop.f32.mrf.mxu0  ;;  %v3206_v54 = vpop.f32.mrf.mxu1 }
 0x2e6   :  { %v3606_v15 = vadd.f32 %v3604_v25, %v3588_v10  ;;  %v3641_v35 = vcombine.high %v3640_v26, %v3640_v26 }
 0x2e7   :  { %v3152_v31 = vpop.f32.mrf.mxu0  ;;  %v3207_v33 = vpop.f32.mrf.mxu1 }
 0x2e8   :  { %v3624_v34 = vadd.f32 %v3622_v30, %v3606_v15 }
 0x2e9   :  { %v3153_v39 = vpop.f32.mrf.mxu0  ;;  %v3208_v40 = vpop.f32.mrf.mxu1 }
 0x2ea   :  { %v4941_v36 = vadd.f32 %v3641_v35, %v3624_v34  ;;  %v4010_v0 = vrot.slane %v3208_v40, %v4819_v32  ;;  %v3984_v1 = vadd.f32 %v3983_v63, %v3153_v39 }
 0x2eb   :  { %v3155_v29 = vpop.f32.mrf.mxu0  ;;  %v3210_v42 = vpop.f32.mrf.mxu1 }
 0x2ec   :  { %v3992_v11 = vrot.slane %v3155_v29, %v4819_v32  ;;  %v4028_v53 = vrot.slane %v3210_v42, %v4819_v32  ;;  %v4017_v2 = vrot.slane %v4010_v0, %v4819_v32 }
 0x2ee   :  { %v3993_v50 = vcombine.high %v3992_v11, %v3992_v11  ;;  %v4029_v4 = vcombine.high %v4028_v53, %v4028_v53  ;;  %v4018_v13 = vcombine.high %v4017_v2, %v4017_v2 }
 0x2f0   :  { %v4000_v59 = vrot.slane %v3993_v50, %v4819_v32  ;;  %v4036_v14 = vrot.slane %v4029_v4, %v4819_v32 }
 0x2f2   :  { %v4002_v60 = vadd.f32 %v4000_v59, %v3984_v1  ;;  %v4037_v15 = vcombine.high %v4036_v14, %v4036_v14 }
 0x2f4   :  { %v4020_v20 = vadd.f32 %v4018_v13, %v4002_v60 }
 0x2f6   :  { %v4039_v39 = vadd.f32 %v4037_v15, %v4020_v20 }
 0x316   :  { %v3247_v43 = vpop.f32.mrf.mxu0  ;;  %v3302_v37 = vpop.f32.mrf.mxu1 }
 0x318   :  { %v3248_v44 = vpop.f32.mrf.mxu0  ;;  %v3303_v45 = vpop.f32.mrf.mxu1 }
 0x31a   :  { %v3249_v3 = vpop.f32.mrf.mxu0  ;;  %v3304_v46 = vpop.f32.mrf.mxu1 }
 0x31c   :  { %v3250_v47 = vpop.f32.mrf.mxu0  ;;  %v3305_v48 = vpop.f32.mrf.mxu1 }
 0x31e   :  { %v3253_v49 = vpop.f32.mrf.mxu0  ;;  %v3308_v38 = vpop.f32.mrf.mxu1 }
 0x31f   :  { %v3645_v23 = vcombine.high %v3253_v49, %v3253_v49  ;;  %v3682_v8 = vcombine.high %v3308_v38, %v3308_v38 }
 0x320   :  { %v3255_v51 = vpop.f32.mrf.mxu0  ;;  %v3310_v52 = vpop.f32.mrf.mxu1 }
 0x321   :  { %v3663_v58 = vcombine.high %v3255_v51, %v3255_v51  ;;  %v3652_v7 = vrot.slane %v3645_v23, %v4819_v32  ;;  %v3701_v9 = vcombine.high %v3310_v52, %v3310_v52  ;;  %v3689_v22 = vrot.slane %v3682_v8, %v4819_v32 }
 0x322   :  { %v3257_v55 = vpop.f32.mrf.mxu0  ;;  %v3312_v57 = vpop.f32.mrf.mxu1  ;;  %v4119_v52 = vsub.s32 0, %v4816_v27 }
 0x323   :  { %v3670_v56 = vrot.slane %v3663_v58, %v4819_v32  ;;  %v3659_v21 = vrot.slane %v3652_v7, %v4819_v32  ;;  %v3708_v24 = vrot.slane %v3701_v9, %v4819_v32  ;;  %v3696_v29 = vrot.slane %v3689_v22, %v4819_v32 }
 0x324   :  { %v3258_v61 = vpop.f32.mrf.mxu0  ;;  %v3313_v62 = vpop.f32.mrf.mxu1 }
 0x325   :  { %v3671_v63 = vcombine.high %v3670_v56, %v3670_v56  ;;  %v3661_v40 = vadd.f32 %v3659_v21, %v4941_v36  ;;  %v3709_v42 = vcombine.high %v3708_v24, %v3708_v24  ;;  %v3697_v47 = vcombine.high %v3696_v29, %v3696_v29 }
 0x326   :  { %v3261_v5 = vpop.f32.mrf.mxu0  ;;  %v3316_v6 = vpop.f32.mrf.mxu1 }
 0x327   :  { %v3678_v31 = vrot.slane %v3671_v63, %v4819_v32  ;;  %v3716_v48 = vrot.slane %v3709_v42, %v4819_v32 }
 0x328   :  { %v3262_v10 = vpop.f32.mrf.mxu0  ;;  %v3317_v12 = vpop.f32.mrf.mxu1 }
 0x329   :  { %v3680_v45 = vadd.f32 %v3678_v31, %v3661_v40  ;;  %v3717_v0 = vcombine.high %v3716_v48, %v3716_v48 }
 0x32a   :  { %v3263_v16 = vpop.f32.mrf.mxu0  ;;  %v3318_v17 = vpop.f32.mrf.mxu1 }
 0x32b   :  { %v4041_v18 = vcombine.high %v3263_v16, %v3263_v16  ;;  %v4078_v19 = vcombine.high %v3318_v17, %v3318_v17  ;;  %v3699_v50 = vadd.f32 %v3697_v47, %v3680_v45 }
 0x32c   :  { %v3265_v41 = vpop.f32.mrf.mxu0  ;;  %v3320_v25 = vpop.f32.mrf.mxu1 }
 0x32d   :  { %v4048_v26 = vrot.slane %v4041_v18, %v4819_v32  ;;  %v4085_v28 = vrot.slane %v4078_v19, %v4819_v32  ;;  %v4059_v54 = vcombine.high %v3265_v41, %v3265_v41  ;;  %v4097_v30 = vcombine.high %v3320_v25, %v3320_v25 }
 0x32e   :  { %v3719_v55 = vadd.f32 %v3717_v0, %v3699_v50 }
 0x32f   :  { %v4055_v33 = vrot.slane %v4048_v26, %v4819_v32  ;;  %v4066_v34 = vrot.slane %v4059_v54, %v4819_v32  ;;  %v4104_v35 = vrot.slane %v4097_v30, %v4819_v32  ;;  %v4092_v43 = vrot.slane %v4085_v28, %v4819_v32 }
 0x331   :  { %v4067_v37 = vcombine.high %v4066_v34, %v4066_v34  ;;  %v4105_v44 = vcombine.high %v4104_v35, %v4104_v35  ;;  %v4057_v3 = vadd.f32 %v4055_v33, %v4039_v39  ;;  %v4093_v49 = vcombine.high %v4092_v43, %v4092_v43 }
 0x333   :  { %v4074_v46 = vrot.slane %v4067_v37, %v4819_v32  ;;  %v4112_v11 = vrot.slane %v4105_v44, %v4819_v32 }
 0x335   :  { %v4076_v38 = vadd.f32 %v4074_v46, %v4057_v3  ;;  %v4113_v51 = vcombine.high %v4112_v11, %v4112_v11 }
 0x337   :  { %v4095_v36 = vadd.f32 %v4093_v49, %v4076_v38 }
 0x339   :  { %v4115_v53 = vadd.f32 %v4113_v51, %v4095_v36 }
 0x33b   :  { %v4120_v57 = vrot.slane %v4115_v53, %v4119_v52 }
 0x33d   :  { %v4123_v58 = vsel %vm4122_vm1, %v3719_v55, %v4120_v57 }
 0x33e   :  { %4124 = vst [vmem:[#allocation11] sm:$0x3] %v4123_v58 }
 0x33f   :  { %4692 = shalt.err (!%p4689_p10)
}
 0x340   :  { %4134 = dma.vmem_to_hbm [thread:$0]  %s4132_s3, 32, %s4974_s4, [#allocation5]  }
 0x341   :  { %4707 = dma.done.wait [#allocation5], 32  }
 0x342   :  { %4708 = vsyncadd [#allocation5], 4294967264 }
 0x343   :  { %4138 = vsyncpa [#allocation4], 1 }
 0x344   :  { %4139 = vsyncpa [#allocation7], 1 }
 0x345   :  { %4140 = vsyncpa [#allocation10], 1 }
 0x346   :  { %4141 = vsyncpa [#allocation5], 1 }

</bundles_post_ra>
